<compile_context>
chip_gen: v6e
topology: v6e:2x2x1
jax: 0.10.0
libtpu: 0.0.40
codegen_flags: <defaults>
</compile_context>

<pallas_src>
import jax
import jax.numpy as jnp
from jax import lax
from jax.experimental import pallas as pl
from jax.experimental.pallas import tpu as pltpu


def _vmem_limit_bytes(*nbytes):
    """Scoped-VMEM limit from actual buffer sizes (x2 for double-buffered
    pipeline stages) + 1 MiB headroom, clamped to [4 MiB, 64 MiB] so it is
    valid on every generation (v7x has 64 MiB per TensorCore)."""
    total = 2 * sum(int(b) for b in nbytes) + (1 << 20)
    return int(min(max(total, 4 << 20), 64 << 20))


# ----------------------------------------------------------------------------
# Generic (M,K)@(K,N)+bias kernel -- used for the one-time embedding-table
# projection and for the input projection of stacked layers l >= 1.
# Grid-less: all operands resident & single-buffered in VMEM.
# ----------------------------------------------------------------------------
def _matmul_bias_kernel(x_ref, w_ref, b_ref, o_ref):
    o_ref[...] = jnp.dot(x_ref[...], w_ref[...],
                         preferred_element_type=jnp.float32) + b_ref[...]


def matmul_bias(x, w_t, b):
    """x: (M, K) f32, w_t: (K, N) f32, b: (1, N) f32 -> (M, N) f32."""
    # TODO(synk): tile M / K with a grid for operands that do not fit VMEM.
    M, K = x.shape
    N = w_t.shape[1]
    vmem = _vmem_limit_bytes(M * K * 4, K * N * 4, N * 4, M * N * 4)
    return pl.pallas_call(
        _matmul_bias_kernel,
        out_shape=jax.ShapeDtypeStruct((M, N), jnp.float32),
        compiler_params=pltpu.CompilerParams(vmem_limit_bytes=vmem),
    )(x, w_t, b)


# ----------------------------------------------------------------------------
# Fused embedding lookup + GRU input projection (layer 0)
#   gi[token] = onehot(token) @ (emb_table @ W_ih^T + b_ih)
# ----------------------------------------------------------------------------
def _onehot_matmul_kernel(ids_ref, p_ref, out_ref):
    # ids_ref: (Np, 1)  int32  -- ALL token ids, resident in VMEM (one bulk DMA)
    # p_ref:   (Vp, 3H) f32    -- projected (+bias) embedding table, resident
    # out_ref: (TN, 3H) f32    -- gi for this token tile (lane-dense, 3H % 128 == 0)
    i = pl.program_id(0)
    tn = out_ref.shape[0]
    vp = p_ref.shape[0]
    start = pl.multiple_of(i * tn, tn)
    ids = ids_ref[pl.ds(start, tn), :]                   # (TN, 1)
    col = lax.broadcasted_iota(jnp.int32, (tn, vp), 1)   # (TN, Vp)
    # NOTE: out-of-range ids (<0 or >= vocab) silently produce all-zero gi
    # rows (nn.Embedding would raise); acceptable only for padding ids.
    onehot = (col == ids).astype(jnp.float32)            # exact 0/1 row select
    out_ref[...] = jnp.dot(onehot, p_ref[...],
                           preferred_element_type=jnp.float32)


def embed_input_proj(x, emb_weight, w_ih, b_ih, *, token_tile=None):
    """x: (B, T) int; emb_weight: (V, E) f32; w_ih: (3H, E); b_ih: (3H,).
    Returns gi time-major: (T, B, 3H) with gi[t, b] = emb[x[b, t]] @ W_ih^T + b_ih.
    The embedding activations `e` never materialize in HBM."""
    B, T = x.shape
    V, E = emb_weight.shape
    threeH = w_ih.shape[0]
    assert E % 128 == 0 and threeH % 128 == 0, "dims must be multiples of 128"

    # One-time weight prep on the MXU (f32): P = emb @ W_ih^T + b_ih.
    # (onehot rows sum to exactly 1, so folding the bias into P is exact.)
    p = matmul_bias(emb_weight.astype(jnp.float32),
                    jnp.transpose(w_ih).astype(jnp.float32),
                    b_ih.reshape(1, threeH).astype(jnp.float32))      # (V, 3H)

    # Lane-pad the vocab / contraction axis to a multiple of 128.
    vp = ((V + 127) // 128) * 128
    if vp != V:
        p = jnp.pad(p, ((0, vp - V), (0, 0)))

    # Transpose the tiny int32 ids (not the activations) so gi comes out
    # time-major directly.
    n = B * T
    ids = jnp.transpose(x).reshape(n).astype(jnp.int32)               # (T*B,)

    # Token tile: single tile when the token count is small, otherwise 256
    # rows (fills v6e/v7x MXU M; two clean 128-row v5e passes) so large token
    # counts give a multi-step "parallel" grid for both v7x TensorCores.
    if token_tile is None:
        token_tile = min(256, ((n + 7) // 8) * 8)
    n_p = ((n + token_tile - 1) // token_tile) * token_tile
    if n_p != n:
        ids = jnp.pad(ids, (0, n_p - n))     # pad with id 0; sliced away below
    ids = ids.reshape(n_p, 1)

    # TODO(synk): for vocabularies beyond a few thousand, K-tile the projected
    # table (extra "arbitrary" axis + f32 accumulator) or switch to a
    # scalar-prefetch row gather instead of a resident one-hot matmul.
    vmem = _vmem_limit_bytes(n_p * 4, vp * threeH * 4, token_tile * threeH * 4)
    gi = pl.pallas_call(
        _onehot_matmul_kernel,
        out_shape=jax.ShapeDtypeStruct((n_p, threeH), jnp.float32),
        grid_spec=pltpu.PrefetchScalarGridSpec(
            num_scalar_prefetch=0,
            grid=(n_p // token_tile,),
            in_specs=[
                pl.BlockSpec((n_p, 1), lambda i: (0, 0)),       # all ids, one DMA
                pl.BlockSpec((vp, threeH), lambda i: (0, 0)),   # resident table
            ],
            out_specs=pl.BlockSpec((token_tile, threeH), lambda i: (i, 0)),
        ),
        compiler_params=pltpu.CompilerParams(
            dimension_semantics=("parallel",),
            vmem_limit_bytes=vmem),
    )(ids, p)

    return gi[:n].reshape(T, B, threeH)


# ----------------------------------------------------------------------------
# GRU recurrence: one grid-less kernel, fori_loop over time inside.
# Only the recurrent matmul (h @ W_hh^T) remains in the loop, in bf16 on the
# MXU with f32 accumulation; gate elementwise math in f32.
# ----------------------------------------------------------------------------
def _gru_recurrence_kernel(gi_ref, whh_ref, bhh_ref, out_ref, hlast_ref):
    # gi_ref:    (T, B, 3H) f32   precomputed x_t @ W_ih^T + b_ih (time-major)
    # whh_ref:   (H, 3H)    bf16  recurrent weights (transposed), loaded once
    # bhh_ref:   (1, 3H)    f32
    # out_ref:   (T, B, H)  f32   per-step hidden states (time-major)
    # hlast_ref: (B, H)     f32   final hidden state (written once)
    T, B, _ = gi_ref.shape
    H = whh_ref.shape[0]
    whh = whh_ref[...]           # hoisted out of the loop
    bhh = bhh_ref[...]

    def step(t, h):
        gi = gi_ref[t]                                            # (B, 3H) f32
        gh = jnp.dot(h.astype(jnp.bfloat16), whh,
                     preferred_element_type=jnp.float32) + bhh    # (B, 3H) f32
        r = jax.nn.sigmoid(gi[:, 0 * H:1 * H] + gh[:, 0 * H:1 * H])
        z = jax.nn.sigmoid(gi[:, 1 * H:2 * H] + gh[:, 1 * H:2 * H])
        n = jnp.tanh(gi[:, 2 * H:3 * H] + r * gh[:, 2 * H:3 * H])
        h_new = (1.0 - z) * n + z * h
        out_ref[t] = h_new
        return h_new

    h0 = jnp.zeros((B, H), jnp.float32)
    h_final = lax.fori_loop(0, T, step, h0, unroll=True)
    hlast_ref[...] = h_final     # single store after the last step


def gru_recurrence(gi_tm, w_hh, b_hh):
    """gi_tm: (T, B, 3H) f32 time-major input projections.
    w_hh: (3H, H) (PyTorch layout); b_hh: (3H,).
    Returns (out_tm (T, B, H) f32, h_last (B, H) f32)."""
    T, B, threeH = gi_tm.shape
    H = threeH // 3
    assert H % 128 == 0, "hidden_size must be a multiple of 128"

    whh_t = jnp.transpose(w_hh).astype(jnp.bfloat16)     # (H, 3H) bf16 MXU operand
    bhh = b_hh.reshape(1, threeH).astype(jnp.float32)

    # TODO(synk): for very long sequences, time-tile gi / out with
    # pltpu.emit_pipeline instead of keeping the whole (T, B, *) slabs in VMEM.
    vmem = _vmem_limit_bytes(T * B * threeH * 4, H * threeH * 2, threeH * 4,
                             T * B * H * 4, B * H * 4)
    out_tm, h_last = pl.pallas_call(
        _gru_recurrence_kernel,
        out_shape=(jax.ShapeDtypeStruct((T, B, H), jnp.float32),
                   jax.ShapeDtypeStruct((B, H), jnp.float32)),
        compiler_params=pltpu.CompilerParams(vmem_limit_bytes=vmem),
    )(gi_tm, whh_t, bhh)
    return out_tm, h_last


def input_proj(out_tm, w_ih, b_ih):
    """Input projection for stacked layers l >= 1, done for ALL timesteps in
    one matmul (M = T*B): gi = out_{l-1} @ W_ih^T + b_ih, time-major."""
    T, B, H = out_tm.shape
    threeH = w_ih.shape[0]
    gi = matmul_bias(out_tm.reshape(T * B, H),
                     jnp.transpose(w_ih).astype(jnp.float32),
                     b_ih.reshape(1, threeH).astype(jnp.float32))
    return gi.reshape(T, B, threeH)


# ----------------------------------------------------------------------------
# Encoder forward (fused embedding/projection + stacked GRU)
# ----------------------------------------------------------------------------
def encoder_forward(x, emb_weight, layer_params, *, cell="gru",
                    bidirectional=False):
    """Returns (h (n_layer, B, H), encoder_out (B, T, H)) like Encoder.forward.
    layer_params: list of (w_ih, w_hh, b_ih, b_hh) per layer (PyTorch layout)."""
    # TODO(synk): lstm cell and bidirectional direction-sum not implemented;
    # the exercised config is a unidirectional GRU. Inter-layer dropout is an
    # eval-mode no-op.
    assert cell == "gru" and not bidirectional

    hs = []
    out_tm = None
    gi = None
    for li, (w_ih, w_hh, b_ih, b_hh) in enumerate(layer_params):
        if li == 0:
            gi = embed_input_proj(x, emb_weight, w_ih, b_ih)   # (T, B, 3H)
        else:
            gi = input_proj(out_tm, w_ih, b_ih)                # (T, B, 3H)
        out_tm, h_last = gru_recurrence(gi, w_hh, b_hh)        # (T,B,H), (B,H)
        hs.append(h_last)

    h = jnp.stack(hs, axis=0)                                  # (n_layer, B, H)
    encoder_out = jnp.transpose(out_tm, (1, 0, 2))             # (B, T, H)
    return h, encoder_out


# ----------------------------------------------------------------------------
# Pure-JAX reference (matches torch.nn.GRU equations) for verification
# ----------------------------------------------------------------------------
def _ref_gru_layer(e, w_ih, w_hh, b_ih, b_hh):
    B, T, _ = e.shape
    H = w_hh.shape[1]
    h = jnp.zeros((B, H), jnp.float32)
    outs = []
    for t in range(T):
        x_t = e[:, t, :]
        gi = x_t @ w_ih.T + b_ih
        gh = h @ w_hh.T + b_hh
        i_r, i_z, i_n = jnp.split(gi, 3, axis=1)
        h_r, h_z, h_n = jnp.split(gh, 3, axis=1)
        r = jax.nn.sigmoid(i_r + h_r)
        z = jax.nn.sigmoid(i_z + h_z)
        n = jnp.tanh(i_n + r * h_n)
        h = (1.0 - z) * n + z * h
        outs.append(h)
    return jnp.stack(outs, axis=1), h


if __name__ == "__main__":
    # config: vocab=32, embedding_dim=128, hidden_size=128, n_layer=1,
    # cell='gru', bidirectional=False; inputs: batch=2, t_len=8
    vocab_size, embedding_dim, hidden_size = 32, 128, 128
    n_layer = 1
    batch, t_len = 2, 8

    key = jax.random.PRNGKey(0)
    k_w, k_x, k0, k1, k2, k3 = jax.random.split(key, 6)

    emb_w = jax.random.normal(k_w, (vocab_size, embedding_dim), jnp.float32)
    x = jax.random.randint(k_x, (batch, t_len), 0, vocab_size, jnp.int32)

    bound = float(1.0 / (hidden_size ** 0.5))
    w_ih = jax.random.uniform(k0, (3 * hidden_size, embedding_dim),
                              jnp.float32, -bound, bound)
    w_hh = jax.random.uniform(k1, (3 * hidden_size, hidden_size),
                              jnp.float32, -bound, bound)
    b_ih = jax.random.uniform(k2, (3 * hidden_size,), jnp.float32, -bound, bound)
    b_hh = jax.random.uniform(k3, (3 * hidden_size,), jnp.float32, -bound, bound)

    layer_params = [(w_ih, w_hh, b_ih, b_hh)]

    fwd = jax.jit(lambda xx, ww, pp: encoder_forward(xx, ww, pp))
    h, enc_out = fwd(x, emb_w, layer_params)
    h = jax.block_until_ready(h)
    enc_out = jax.block_until_ready(enc_out)

    # reference: exact gather + pure-JAX f32 GRU
    e_ref = emb_w[x]
    out_ref, h_ref = _ref_gru_layer(e_ref, w_ih, w_hh, b_ih, b_hh)

    assert enc_out.shape == (batch, t_len, hidden_size)
    assert h.shape == (n_layer, batch, hidden_size)
    # Tolerance loosened to 2e-2: the recurrent matmul uses bf16 MXU operands
    # (h, W_hh) with f32 accumulation, per the perf review.
    assert jnp.allclose(enc_out, out_ref, atol=2e-2, rtol=2e-2), \
        "encoder_out mismatch vs reference"
    assert jnp.allclose(h[0], h_ref, atol=2e-2, rtol=2e-2), \
        "hidden state mismatch vs reference"

    print("KERNEL_OK")
</pallas_src>

<mosaic_0001>
module attributes {stable_mosaic.version = 11 : i64} {
  func.func @_matmul_bias_kernel(%arg0: memref<32x128xf32, #tpu.memory_space<vmem>>, %arg1: memref<128x384xf32, #tpu.memory_space<vmem>>, %arg2: memref<1x384xf32, #tpu.memory_space<vmem>>, %arg3: memref<32x384xf32, #tpu.memory_space<vmem>>) attributes {dimension_semantics = [], scalar_prefetch = 0 : i64, scratch_operands = 0 : i64, tpu.core_type = #tpu.core_type<tc>} {
    %c0 = arith.constant 0 : index
    %c0_0 = arith.constant 0 : index
    %0 = vector.load %arg0[%c0, %c0_0] : memref<32x128xf32, #tpu.memory_space<vmem>>, vector<32x128xf32>
    %c0_1 = arith.constant 0 : index
    %c0_2 = arith.constant 0 : index
    %1 = vector.load %arg1[%c0_1, %c0_2] : memref<128x384xf32, #tpu.memory_space<vmem>>, vector<128x384xf32>
    %cst = arith.constant dense<0.000000e+00> : vector<32x384xf32>
    %2 = tpu.matmul %0, %1, %cst {dimension_numbers = #tpu.dot_dimension_numbers<[1], [0], [0], [1], [0, 0, 1, 1], [], []>} : vector<32x128xf32>, vector<128x384xf32>, vector<32x384xf32> -> vector<32x384xf32>
    %c0_3 = arith.constant 0 : index
    %c0_4 = arith.constant 0 : index
    %3 = vector.load %arg2[%c0_3, %c0_4] : memref<1x384xf32, #tpu.memory_space<vmem>>, vector<1x384xf32>
    %4 = vector.broadcast %3 : vector<1x384xf32> to vector<32x384xf32>
    %5 = arith.addf %2, %4 : vector<32x384xf32>
    %c0_5 = arith.constant 0 : index
    %c0_6 = arith.constant 0 : index
    %6 = vector.load %arg3[%c0_5, %c0_6] : memref<32x384xf32, #tpu.memory_space<vmem>>, vector<32x384xf32>
    tpu.vector_store %arg3[%c0_5, %c0_6], %5 {strides = array<i32>} : memref<32x384xf32, #tpu.memory_space<vmem>>, vector<32x384xf32>,
    return
  }
}

module attributes {stable_mosaic.version = 11 : i64} {
  func.func @_onehot_matmul_kernel(%arg0: i32, %arg1: memref<16x1xi32, #tpu.memory_space<vmem>>, %arg2: memref<128x384xf32, #tpu.memory_space<vmem>>, %arg3: memref<16x384xf32, #tpu.memory_space<vmem>>) attributes {dimension_semantics = [#tpu.dimension_semantics<parallel>], iteration_bounds = array<i64: 1>, scalar_prefetch = 0 : i64, scratch_operands = 0 : i64, tpu.core_type = #tpu.core_type<tc>, window_params = [{pipeline_mode = #tpu.pipeline_mode<synchronous>, transform_indices = @transform_0, window_bounds = array<i64: 16, 1>}, {pipeline_mode = #tpu.pipeline_mode<synchronous>, transform_indices = @transform_1, window_bounds = array<i64: 128, 384>}, {transform_indices = @transform_2, window_bounds = array<i64: 16, 384>}]} {
    %c16_i32 = arith.constant 16 : i32
    %0 = arith.muli %arg0, %c16_i32 : i32
    %1 = tpu.assume_multiple %0, 16 : i32
    %2 = arith.index_cast %1 : i32 to index
    %c0 = arith.constant 0 : index
    %3 = vector.load %arg1[%2, %c0] : memref<16x1xi32, #tpu.memory_space<vmem>>, vector<16x1xi32>
    %4 = tpu.iota {dimensions = array<i32: 1>} : vector<16x128xi32>
    %5 = vector.broadcast %3 : vector<16x1xi32> to vector<16x128xi32>
    %6 = arith.cmpi eq, %4, %5 : vector<16x128xi32>
    %7 = arith.extui %6 : vector<16x128xi1> to vector<16x128xi32>
    %8 = arith.sitofp %7 : vector<16x128xi32> to vector<16x128xf32>
    %c0_0 = arith.constant 0 : index
    %c0_1 = arith.constant 0 : index
    %9 = vector.load %arg2[%c0_0, %c0_1] : memref<128x384xf32, #tpu.memory_space<vmem>>, vector<128x384xf32>
    %cst = arith.constant dense<0.000000e+00> : vector<16x384xf32>
    %10 = tpu.matmul %8, %9, %cst {dimension_numbers = #tpu.dot_dimension_numbers<[1], [0], [0], [1], [0, 0, 1, 1], [], []>} : vector<16x128xf32>, vector<128x384xf32>, vector<16x384xf32> -> vector<16x384xf32>
    %c0_2 = arith.constant 0 : index
    %c0_3 = arith.constant 0 : index
    %11 = vector.load %arg3[%c0_2, %c0_3] : memref<16x384xf32, #tpu.memory_space<vmem>>, vector<16x384xf32>
    tpu.vector_store %arg3[%c0_2, %c0_3], %10 {strides = array<i32>} : memref<16x384xf32, #tpu.memory_space<vmem>>, vector<16x384xf32>,
    return
  }
  func.func @transform_0(%arg0: i32) -> (i32, i32) {
    %c0_i32 = arith.constant 0 : i32
    %c0_i32_0 = arith.constant 0 : i32
    %c0_i32_1 = arith.constant 0 : i32
    return %c0_i32, %c0_i32_0 : i32, i32
  }
  func.func @transform_1(%arg0: i32) -> (i32, i32) {
    %c0_i32 = arith.constant 0 : i32
    %c0_i32_0 = arith.constant 0 : i32
    %c0_i32_1 = arith.constant 0 : i32
    return %c0_i32, %c0_i32_0 : i32, i32
  }
  func.func @transform_2(%arg0: i32) -> (i32, i32) {
    %c0_i32 = arith.constant 0 : i32
    %c0_i32_0 = arith.constant 0 : i32
    return %arg0, %c0_i32 : i32, i32
  }
}

module attributes {stable_mosaic.version = 11 : i64} {
  func.func @_gru_recurrence_kernel(%arg0: memref<8x2x384xf32, #tpu.memory_space<vmem>>, %arg1: memref<128x384xbf16, #tpu.memory_space<vmem>>, %arg2: memref<1x384xf32, #tpu.memory_space<vmem>>, %arg3: memref<8x2x128xf32, #tpu.memory_space<vmem>>, %arg4: memref<2x128xf32, #tpu.memory_space<vmem>>) attributes {dimension_semantics = [], scalar_prefetch = 0 : i64, scratch_operands = 0 : i64, tpu.core_type = #tpu.core_type<tc>} {
    %c0 = arith.constant 0 : index
    %c0_0 = arith.constant 0 : index
    %0 = vector.load %arg1[%c0, %c0_0] : memref<128x384xbf16, #tpu.memory_space<vmem>>, vector<128x384xbf16>
    %c0_1 = arith.constant 0 : index
    %c0_2 = arith.constant 0 : index
    %1 = vector.load %arg2[%c0_1, %c0_2] : memref<1x384xf32, #tpu.memory_space<vmem>>, vector<1x384xf32>
    %cst = arith.constant 0.000000e+00 : f32
    %2 = vector.broadcast %cst : f32 to vector<2x128xf32>
    %c0_i32 = arith.constant 0 : i32
    %3 = arith.index_cast %c0_i32 : i32 to index
    %c0_3 = arith.constant 0 : index
    %c0_4 = arith.constant 0 : index
    %4 = vector.load %arg0[%3, %c0_3, %c0_4] : memref<8x2x384xf32, #tpu.memory_space<vmem>>, vector<1x2x384xf32>
    %5 = vector.shape_cast %4 : vector<1x2x384xf32> to vector<2x384xf32>
    %6 = arith.truncf %2 : vector<2x128xf32> to vector<2x128xbf16>
    %cst_5 = arith.constant dense<0.000000e+00> : vector<2x384xf32>
    %7 = tpu.matmul %6, %0, %cst_5 {dimension_numbers = #tpu.dot_dimension_numbers<[1], [0], [0], [1], [0, 0, 1, 1], [], []>} : vector<2x128xbf16>, vector<128x384xbf16>, vector<2x384xf32> -> vector<2x384xf32>
    %8 = vector.broadcast %1 : vector<1x384xf32> to vector<2x384xf32>
    %9 = arith.addf %7, %8 : vector<2x384xf32>
    %10 = vector.extract_strided_slice %5 {offsets = [0, 0], sizes = [2, 128], strides = [1, 1]} : vector<2x384xf32> to vector<2x128xf32>
    %11 = vector.extract_strided_slice %9 {offsets = [0, 0], sizes = [2, 128], strides = [1, 1]} : vector<2x384xf32> to vector<2x128xf32>
    %12 = arith.addf %10, %11 : vector<2x128xf32>
    %13 = arith.negf %12 : vector<2x128xf32>
    %14 = math.exp %13 : vector<2x128xf32>
    %cst_6 = arith.constant 1.000000e+00 : f32
    %15 = vector.broadcast %cst_6 : f32 to vector<2x128xf32>
    %16 = arith.addf %15, %14 : vector<2x128xf32>
    %17 = arith.divf %15, %16 : vector<2x128xf32>
    %18 = vector.extract_strided_slice %5 {offsets = [0, 128], sizes = [2, 128], strides = [1, 1]} : vector<2x384xf32> to vector<2x128xf32>
    %19 = vector.extract_strided_slice %9 {offsets = [0, 128], sizes = [2, 128], strides = [1, 1]} : vector<2x384xf32> to vector<2x128xf32>
    %20 = arith.addf %18, %19 : vector<2x128xf32>
    %21 = arith.negf %20 : vector<2x128xf32>
    %22 = math.exp %21 : vector<2x128xf32>
    %cst_7 = arith.constant 1.000000e+00 : f32
    %23 = vector.broadcast %cst_7 : f32 to vector<2x128xf32>
    %24 = arith.addf %23, %22 : vector<2x128xf32>
    %25 = arith.divf %23, %24 : vector<2x128xf32>
    %26 = vector.extract_strided_slice %5 {offsets = [0, 256], sizes = [2, 128], strides = [1, 1]} : vector<2x384xf32> to vector<2x128xf32>
    %27 = vector.extract_strided_slice %9 {offsets = [0, 256], sizes = [2, 128], strides = [1, 1]} : vector<2x384xf32> to vector<2x128xf32>
    %28 = arith.mulf %17, %27 : vector<2x128xf32>
    %29 = arith.addf %26, %28 : vector<2x128xf32>
    %30 = math.tanh %29 : vector<2x128xf32>
    %cst_8 = arith.constant 1.000000e+00 : f32
    %31 = vector.broadcast %cst_8 : f32 to vector<2x128xf32>
    %32 = arith.subf %31, %25 : vector<2x128xf32>
    %33 = arith.mulf %32, %30 : vector<2x128xf32>
    %34 = arith.mulf %25, %2 : vector<2x128xf32>
    %35 = arith.addf %33, %34 : vector<2x128xf32>
    %36 = arith.index_cast %c0_i32 : i32 to index
    %c0_9 = arith.constant 0 : index
    %c0_10 = arith.constant 0 : index
    %37 = vector.load %arg3[%36, %c0_9, %c0_10] : memref<8x2x128xf32, #tpu.memory_space<vmem>>, vector<1x2x128xf32>
    %38 = vector.shape_cast %37 : vector<1x2x128xf32> to vector<2x128xf32>
    %39 = vector.shape_cast %35 : vector<2x128xf32> to vector<1x2x128xf32>
    tpu.vector_store %arg3[%36, %c0_9, %c0_10], %39 {strides = array<i32>} : memref<8x2x128xf32, #tpu.memory_space<vmem>>, vector<1x2x128xf32>,
    %c1_i32 = arith.constant 1 : i32
    %40 = arith.index_cast %c1_i32 : i32 to index
    %c0_11 = arith.constant 0 : index
    %c0_12 = arith.constant 0 : index
    %41 = vector.load %arg0[%40, %c0_11, %c0_12] : memref<8x2x384xf32, #tpu.memory_space<vmem>>, vector<1x2x384xf32>
    %42 = vector.shape_cast %41 : vector<1x2x384xf32> to vector<2x384xf32>
    %43 = arith.truncf %35 : vector<2x128xf32> to vector<2x128xbf16>
    %cst_13 = arith.constant dense<0.000000e+00> : vector<2x384xf32>
    %44 = tpu.matmul %43, %0, %cst_13 {dimension_numbers = #tpu.dot_dimension_numbers<[1], [0], [0], [1], [0, 0, 1, 1], [], []>} : vector<2x128xbf16>, vector<128x384xbf16>, vector<2x384xf32> -> vector<2x384xf32>
    %45 = vector.broadcast %1 : vector<1x384xf32> to vector<2x384xf32>
    %46 = arith.addf %44, %45 : vector<2x384xf32>
    %47 = vector.extract_strided_slice %42 {offsets = [0, 0], sizes = [2, 128], strides = [1, 1]} : vector<2x384xf32> to vector<2x128xf32>
    %48 = vector.extract_strided_slice %46 {offsets = [0, 0], sizes = [2, 128], strides = [1, 1]} : vector<2x384xf32> to vector<2x128xf32>
    %49 = arith.addf %47, %48 : vector<2x128xf32>
    %50 = arith.negf %49 : vector<2x128xf32>
    %51 = math.exp %50 : vector<2x128xf32>
    %cst_14 = arith.constant 1.000000e+00 : f32
    %52 = vector.broadcast %cst_14 : f32 to vector<2x128xf32>
    %53 = arith.addf %52, %51 : vector<2x128xf32>
    %54 = arith.divf %52, %53 : vector<2x128xf32>
    %55 = vector.extract_strided_slice %42 {offsets = [0, 128], sizes = [2, 128], strides = [1, 1]} : vector<2x384xf32> to vector<2x128xf32>
    %56 = vector.extract_strided_slice %46 {offsets = [0, 128], sizes = [2, 128], strides = [1, 1]} : vector<2x384xf32> to vector<2x128xf32>
    %57 = arith.addf %55, %56 : vector<2x128xf32>
    %58 = arith.negf %57 : vector<2x128xf32>
    %59 = math.exp %58 : vector<2x128xf32>
    %cst_15 = arith.constant 1.000000e+00 : f32
    %60 = vector.broadcast %cst_15 : f32 to vector<2x128xf32>
    %61 = arith.addf %60, %59 : vector<2x128xf32>
    %62 = arith.divf %60, %61 : vector<2x128xf32>
    %63 = vector.extract_strided_slice %42 {offsets = [0, 256], sizes = [2, 128], strides = [1, 1]} : vector<2x384xf32> to vector<2x128xf32>
    %64 = vector.extract_strided_slice %46 {offsets = [0, 256], sizes = [2, 128], strides = [1, 1]} : vector<2x384xf32> to vector<2x128xf32>
    %65 = arith.mulf %54, %64 : vector<2x128xf32>
    %66 = arith.addf %63, %65 : vector<2x128xf32>
    %67 = math.tanh %66 : vector<2x128xf32>
    %cst_16 = arith.constant 1.000000e+00 : f32
    %68 = vector.broadcast %cst_16 : f32 to vector<2x128xf32>
    %69 = arith.subf %68, %62 : vector<2x128xf32>
    %70 = arith.mulf %69, %67 : vector<2x128xf32>
    %71 = arith.mulf %62, %35 : vector<2x128xf32>
    %72 = arith.addf %70, %71 : vector<2x128xf32>
    %73 = arith.index_cast %c1_i32 : i32 to index
    %c0_17 = arith.constant 0 : index
    %c0_18 = arith.constant 0 : index
    %74 = vector.load %arg3[%73, %c0_17, %c0_18] : memref<8x2x128xf32, #tpu.memory_space<vmem>>, vector<1x2x128xf32>
    %75 = vector.shape_cast %74 : vector<1x2x128xf32> to vector<2x128xf32>
    %76 = vector.shape_cast %72 : vector<2x128xf32> to vector<1x2x128xf32>
    tpu.vector_store %arg3[%73, %c0_17, %c0_18], %76 {strides = array<i32>} : memref<8x2x128xf32, #tpu.memory_space<vmem>>, vector<1x2x128xf32>,
    %c2_i32 = arith.constant 2 : i32
    %77 = arith.index_cast %c2_i32 : i32 to index
    %c0_19 = arith.constant 0 : index
    %c0_20 = arith.constant 0 : index
    %78 = vector.load %arg0[%77, %c0_19, %c0_20] : memref<8x2x384xf32, #tpu.memory_space<vmem>>, vector<1x2x384xf32>
    %79 = vector.shape_cast %78 : vector<1x2x384xf32> to vector<2x384xf32>
    %80 = arith.truncf %72 : vector<2x128xf32> to vector<2x128xbf16>
    %cst_21 = arith.constant dense<0.000000e+00> : vector<2x384xf32>
    %81 = tpu.matmul %80, %0, %cst_21 {dimension_numbers = #tpu.dot_dimension_numbers<[1], [0], [0], [1], [0, 0, 1, 1], [], []>} : vector<2x128xbf16>, vector<128x384xbf16>, vector<2x384xf32> -> vector<2x384xf32>
    %82 = vector.broadcast %1 : vector<1x384xf32> to vector<2x384xf32>
    %83 = arith.addf %81, %82 : vector<2x384xf32>
    %84 = vector.extract_strided_slice %79 {offsets = [0, 0], sizes = [2, 128], strides = [1, 1]} : vector<2x384xf32> to vector<2x128xf32>
    %85 = vector.extract_strided_slice %83 {offsets = [0, 0], sizes = [2, 128], strides = [1, 1]} : vector<2x384xf32> to vector<2x128xf32>
    %86 = arith.addf %84, %85 : vector<2x128xf32>
    %87 = arith.negf %86 : vector<2x128xf32>
    %88 = math.exp %87 : vector<2x128xf32>
    %cst_22 = arith.constant 1.000000e+00 : f32
    %89 = vector.broadcast %cst_22 : f32 to vector<2x128xf32>
    %90 = arith.addf %89, %88 : vector<2x128xf32>
    %91 = arith.divf %89, %90 : vector<2x128xf32>
    %92 = vector.extract_strided_slice %79 {offsets = [0, 128], sizes = [2, 128], strides = [1, 1]} : vector<2x384xf32> to vector<2x128xf32>
    %93 = vector.extract_strided_slice %83 {offsets = [0, 128], sizes = [2, 128], strides = [1, 1]} : vector<2x384xf32> to vector<2x128xf32>
    %94 = arith.addf %92, %93 : vector<2x128xf32>
    %95 = arith.negf %94 : vector<2x128xf32>
    %96 = math.exp %95 : vector<2x128xf32>
    %cst_23 = arith.constant 1.000000e+00 : f32
    %97 = vector.broadcast %cst_23 : f32 to vector<2x128xf32>
    %98 = arith.addf %97, %96 : vector<2x128xf32>
    %99 = arith.divf %97, %98 : vector<2x128xf32>
    %100 = vector.extract_strided_slice %79 {offsets = [0, 256], sizes = [2, 128], strides = [1, 1]} : vector<2x384xf32> to vector<2x128xf32>
    %101 = vector.extract_strided_slice %83 {offsets = [0, 256], sizes = [2, 128], strides = [1, 1]} : vector<2x384xf32> to vector<2x128xf32>
    %102 = arith.mulf %91, %101 : vector<2x128xf32>
    %103 = arith.addf %100, %102 : vector<2x128xf32>
    %104 = math.tanh %103 : vector<2x128xf32>
    %cst_24 = arith.constant 1.000000e+00 : f32
    %105 = vector.broadcast %cst_24 : f32 to vector<2x128xf32>
    %106 = arith.subf %105, %99 : vector<2x128xf32>
    %107 = arith.mulf %106, %104 : vector<2x128xf32>
    %108 = arith.mulf %99, %72 : vector<2x128xf32>
    %109 = arith.addf %107, %108 : vector<2x128xf32>
    %110 = arith.index_cast %c2_i32 : i32 to index
    %c0_25 = arith.constant 0 : index
    %c0_26 = arith.constant 0 : index
    %111 = vector.load %arg3[%110, %c0_25, %c0_26] : memref<8x2x128xf32, #tpu.memory_space<vmem>>, vector<1x2x128xf32>
    %112 = vector.shape_cast %111 : vector<1x2x128xf32> to vector<2x128xf32>
    %113 = vector.shape_cast %109 : vector<2x128xf32> to vector<1x2x128xf32>
    tpu.vector_store %arg3[%110, %c0_25, %c0_26], %113 {strides = array<i32>} : memref<8x2x128xf32, #tpu.memory_space<vmem>>, vector<1x2x128xf32>,
    %c3_i32 = arith.constant 3 : i32
    %114 = arith.index_cast %c3_i32 : i32 to index
    %c0_27 = arith.constant 0 : index
    %c0_28 = arith.constant 0 : index
    %115 = vector.load %arg0[%114, %c0_27, %c0_28] : memref<8x2x384xf32, #tpu.memory_space<vmem>>, vector<1x2x384xf32>
    %116 = vector.shape_cast %115 : vector<1x2x384xf32> to vector<2x384xf32>
    %117 = arith.truncf %109 : vector<2x128xf32> to vector<2x128xbf16>
    %cst_29 = arith.constant dense<0.000000e+00> : vector<2x384xf32>
    %118 = tpu.matmul %117, %0, %cst_29 {dimension_numbers = #tpu.dot_dimension_numbers<[1], [0], [0], [1], [0, 0, 1, 1], [], []>} : vector<2x128xbf16>, vector<128x384xbf16>, vector<2x384xf32> -> vector<2x384xf32>
    %119 = vector.broadcast %1 : vector<1x384xf32> to vector<2x384xf32>
    %120 = arith.addf %118, %119 : vector<2x384xf32>
    %121 = vector.extract_strided_slice %116 {offsets = [0, 0], sizes = [2, 128], strides = [1, 1]} : vector<2x384xf32> to vector<2x128xf32>
    %122 = vector.extract_strided_slice %120 {offsets = [0, 0], sizes = [2, 128], strides = [1, 1]} : vector<2x384xf32> to vector<2x128xf32>
    %123 = arith.addf %121, %122 : vector<2x128xf32>
    %124 = arith.negf %123 : vector<2x128xf32>
    %125 = math.exp %124 : vector<2x128xf32>
    %cst_30 = arith.constant 1.000000e+00 : f32
    %126 = vector.broadcast %cst_30 : f32 to vector<2x128xf32>
    %127 = arith.addf %126, %125 : vector<2x128xf32>
    %128 = arith.divf %126, %127 : vector<2x128xf32>
    %129 = vector.extract_strided_slice %116 {offsets = [0, 128], sizes = [2, 128], strides = [1, 1]} : vector<2x384xf32> to vector<2x128xf32>
    %130 = vector.extract_strided_slice %120 {offsets = [0, 128], sizes = [2, 128], strides = [1, 1]} : vector<2x384xf32> to vector<2x128xf32>
    %131 = arith.addf %129, %130 : vector<2x128xf32>
    %132 = arith.negf %131 : vector<2x128xf32>
    %133 = math.exp %132 : vector<2x128xf32>
    %cst_31 = arith.constant 1.000000e+00 : f32
    %134 = vector.broadcast %cst_31 : f32 to vector<2x128xf32>
    %135 = arith.addf %134, %133 : vector<2x128xf32>
    %136 = arith.divf %134, %135 : vector<2x128xf32>
    %137 = vector.extract_strided_slice %116 {offsets = [0, 256], sizes = [2, 128], strides = [1, 1]} : vector<2x384xf32> to vector<2x128xf32>
    %138 = vector.extract_strided_slice %120 {offsets = [0, 256], sizes = [2, 128], strides = [1, 1]} : vector<2x384xf32> to vector<2x128xf32>
    %139 = arith.mulf %128, %138 : vector<2x128xf32>
    %140 = arith.addf %137, %139 : vector<2x128xf32>
    %141 = math.tanh %140 : vector<2x128xf32>
    %cst_32 = arith.constant 1.000000e+00 : f32
    %142 = vector.broadcast %cst_32 : f32 to vector<2x128xf32>
    %143 = arith.subf %142, %136 : vector<2x128xf32>
    %144 = arith.mulf %143, %141 : vector<2x128xf32>
    %145 = arith.mulf %136, %109 : vector<2x128xf32>
    %146 = arith.addf %144, %145 : vector<2x128xf32>
    %147 = arith.index_cast %c3_i32 : i32 to index
    %c0_33 = arith.constant 0 : index
    %c0_34 = arith.constant 0 : index
    %148 = vector.load %arg3[%147, %c0_33, %c0_34] : memref<8x2x128xf32, #tpu.memory_space<vmem>>, vector<1x2x128xf32>
    %149 = vector.shape_cast %148 : vector<1x2x128xf32> to vector<2x128xf32>
    %150 = vector.shape_cast %146 : vector<2x128xf32> to vector<1x2x128xf32>
    tpu.vector_store %arg3[%147, %c0_33, %c0_34], %150 {strides = array<i32>} : memref<8x2x128xf32, #tpu.memory_space<vmem>>, vector<1x2x128xf32>,
    %c4_i32 = arith.constant 4 : i32
    %151 = arith.index_cast %c4_i32 : i32 to index
    %c0_35 = arith.constant 0 : index
    %c0_36 = arith.constant 0 : index
    %152 = vector.load %arg0[%151, %c0_35, %c0_36] : memref<8x2x384xf32, #tpu.memory_space<vmem>>, vector<1x2x384xf32>
    %153 = vector.shape_cast %152 : vector<1x2x384xf32> to vector<2x384xf32>
    %154 = arith.truncf %146 : vector<2x128xf32> to vector<2x128xbf16>
    %cst_37 = arith.constant dense<0.000000e+00> : vector<2x384xf32>
    %155 = tpu.matmul %154, %0, %cst_37 {dimension_numbers = #tpu.dot_dimension_numbers<[1], [0], [0], [1], [0, 0, 1, 1], [], []>} : vector<2x128xbf16>, vector<128x384xbf16>, vector<2x384xf32> -> vector<2x384xf32>
    %156 = vector.broadcast %1 : vector<1x384xf32> to vector<2x384xf32>
    %157 = arith.addf %155, %156 : vector<2x384xf32>
    %158 = vector.extract_strided_slice %153 {offsets = [0, 0], sizes = [2, 128], strides = [1, 1]} : vector<2x384xf32> to vector<2x128xf32>
    %159 = vector.extract_strided_slice %157 {offsets = [0, 0], sizes = [2, 128], strides = [1, 1]} : vector<2x384xf32> to vector<2x128xf32>
    %160 = arith.addf %158, %159 : vector<2x128xf32>
    %161 = arith.negf %160 : vector<2x128xf32>
    %162 = math.exp %161 : vector<2x128xf32>
    %cst_38 = arith.constant 1.000000e+00 : f32
    %163 = vector.broadcast %cst_38 : f32 to vector<2x128xf32>
    %164 = arith.addf %163, %162 : vector<2x128xf32>
    %165 = arith.divf %163, %164 : vector<2x128xf32>
    %166 = vector.extract_strided_slice %153 {offsets = [0, 128], sizes = [2, 128], strides = [1, 1]} : vector<2x384xf32> to vector<2x128xf32>
    %167 = vector.extract_strided_slice %157 {offsets = [0, 128], sizes = [2, 128], strides = [1, 1]} : vector<2x384xf32> to vector<2x128xf32>
    %168 = arith.addf %166, %167 : vector<2x128xf32>
    %169 = arith.negf %168 : vector<2x128xf32>
    %170 = math.exp %169 : vector<2x128xf32>
    %cst_39 = arith.constant 1.000000e+00 : f32
    %171 = vector.broadcast %cst_39 : f32 to vector<2x128xf32>
    %172 = arith.addf %171, %170 : vector<2x128xf32>
    %173 = arith.divf %171, %172 : vector<2x128xf32>
    %174 = vector.extract_strided_slice %153 {offsets = [0, 256], sizes = [2, 128], strides = [1, 1]} : vector<2x384xf32> to vector<2x128xf32>
    %175 = vector.extract_strided_slice %157 {offsets = [0, 256], sizes = [2, 128], strides = [1, 1]} : vector<2x384xf32> to vector<2x128xf32>
    %176 = arith.mulf %165, %175 : vector<2x128xf32>
    %177 = arith.addf %174, %176 : vector<2x128xf32>
    %178 = math.tanh %177 : vector<2x128xf32>
    %cst_40 = arith.constant 1.000000e+00 : f32
    %179 = vector.broadcast %cst_40 : f32 to vector<2x128xf32>
    %180 = arith.subf %179, %173 : vector<2x128xf32>
    %181 = arith.mulf %180, %178 : vector<2x128xf32>
    %182 = arith.mulf %173, %146 : vector<2x128xf32>
    %183 = arith.addf %181, %182 : vector<2x128xf32>
    %184 = arith.index_cast %c4_i32 : i32 to index
    %c0_41 = arith.constant 0 : index
    %c0_42 = arith.constant 0 : index
    %185 = vector.load %arg3[%184, %c0_41, %c0_42] : memref<8x2x128xf32, #tpu.memory_space<vmem>>, vector<1x2x128xf32>
    %186 = vector.shape_cast %185 : vector<1x2x128xf32> to vector<2x128xf32>
    %187 = vector.shape_cast %183 : vector<2x128xf32> to vector<1x2x128xf32>
    tpu.vector_store %arg3[%184, %c0_41, %c0_42], %187 {strides = array<i32>} : memref<8x2x128xf32, #tpu.memory_space<vmem>>, vector<1x2x128xf32>,
    %c5_i32 = arith.constant 5 : i32
    %188 = arith.index_cast %c5_i32 : i32 to index
    %c0_43 = arith.constant 0 : index
    %c0_44 = arith.constant 0 : index
    %189 = vector.load %arg0[%188, %c0_43, %c0_44] : memref<8x2x384xf32, #tpu.memory_space<vmem>>, vector<1x2x384xf32>
    %190 = vector.shape_cast %189 : vector<1x2x384xf32> to vector<2x384xf32>
    %191 = arith.truncf %183 : vector<2x128xf32> to vector<2x128xbf16>
    %cst_45 = arith.constant dense<0.000000e+00> : vector<2x384xf32>
    %192 = tpu.matmul %191, %0, %cst_45 {dimension_numbers = #tpu.dot_dimension_numbers<[1], [0], [0], [1], [0, 0, 1, 1], [], []>} : vector<2x128xbf16>, vector<128x384xbf16>, vector<2x384xf32> -> vector<2x384xf32>
    %193 = vector.broadcast %1 : vector<1x384xf32> to vector<2x384xf32>
    %194 = arith.addf %192, %193 : vector<2x384xf32>
    %195 = vector.extract_strided_slice %190 {offsets = [0, 0], sizes = [2, 128], strides = [1, 1]} : vector<2x384xf32> to vector<2x128xf32>
    %196 = vector.extract_strided_slice %194 {offsets = [0, 0], sizes = [2, 128], strides = [1, 1]} : vector<2x384xf32> to vector<2x128xf32>
    %197 = arith.addf %195, %196 : vector<2x128xf32>
    %198 = arith.negf %197 : vector<2x128xf32>
    %199 = math.exp %198 : vector<2x128xf32>
    %cst_46 = arith.constant 1.000000e+00 : f32
    %200 = vector.broadcast %cst_46 : f32 to vector<2x128xf32>
    %201 = arith.addf %200, %199 : vector<2x128xf32>
    %202 = arith.divf %200, %201 : vector<2x128xf32>
    %203 = vector.extract_strided_slice %190 {offsets = [0, 128], sizes = [2, 128], strides = [1, 1]} : vector<2x384xf32> to vector<2x128xf32>
    %204 = vector.extract_strided_slice %194 {offsets = [0, 128], sizes = [2, 128], strides = [1, 1]} : vector<2x384xf32> to vector<2x128xf32>
    %205 = arith.addf %203, %204 : vector<2x128xf32>
    %206 = arith.negf %205 : vector<2x128xf32>
    %207 = math.exp %206 : vector<2x128xf32>
    %cst_47 = arith.constant 1.000000e+00 : f32
    %208 = vector.broadcast %cst_47 : f32 to vector<2x128xf32>
    %209 = arith.addf %208, %207 : vector<2x128xf32>
    %210 = arith.divf %208, %209 : vector<2x128xf32>
    %211 = vector.extract_strided_slice %190 {offsets = [0, 256], sizes = [2, 128], strides = [1, 1]} : vector<2x384xf32> to vector<2x128xf32>
    %212 = vector.extract_strided_slice %194 {offsets = [0, 256], sizes = [2, 128], strides = [1, 1]} : vector<2x384xf32> to vector<2x128xf32>
    %213 = arith.mulf %202, %212 : vector<2x128xf32>
    %214 = arith.addf %211, %213 : vector<2x128xf32>
    %215 = math.tanh %214 : vector<2x128xf32>
    %cst_48 = arith.constant 1.000000e+00 : f32
    %216 = vector.broadcast %cst_48 : f32 to vector<2x128xf32>
    %217 = arith.subf %216, %210 : vector<2x128xf32>
    %218 = arith.mulf %217, %215 : vector<2x128xf32>
    %219 = arith.mulf %210, %183 : vector<2x128xf32>
    %220 = arith.addf %218, %219 : vector<2x128xf32>
    %221 = arith.index_cast %c5_i32 : i32 to index
    %c0_49 = arith.constant 0 : index
    %c0_50 = arith.constant 0 : index
    %222 = vector.load %arg3[%221, %c0_49, %c0_50] : memref<8x2x128xf32, #tpu.memory_space<vmem>>, vector<1x2x128xf32>
    %223 = vector.shape_cast %222 : vector<1x2x128xf32> to vector<2x128xf32>
    %224 = vector.shape_cast %220 : vector<2x128xf32> to vector<1x2x128xf32>
    tpu.vector_store %arg3[%221, %c0_49, %c0_50], %224 {strides = array<i32>} : memref<8x2x128xf32, #tpu.memory_space<vmem>>, vector<1x2x128xf32>,
    %c6_i32 = arith.constant 6 : i32
    %225 = arith.index_cast %c6_i32 : i32 to index
    %c0_51 = arith.constant 0 : index
    %c0_52 = arith.constant 0 : index
    %226 = vector.load %arg0[%225, %c0_51, %c0_52] : memref<8x2x384xf32, #tpu.memory_space<vmem>>, vector<1x2x384xf32>
    %227 = vector.shape_cast %226 : vector<1x2x384xf32> to vector<2x384xf32>
    %228 = arith.truncf %220 : vector<2x128xf32> to vector<2x128xbf16>
    %cst_53 = arith.constant dense<0.000000e+00> : vector<2x384xf32>
    %229 = tpu.matmul %228, %0, %cst_53 {dimension_numbers = #tpu.dot_dimension_numbers<[1], [0], [0], [1], [0, 0, 1, 1], [], []>} : vector<2x128xbf16>, vector<128x384xbf16>, vector<2x384xf32> -> vector<2x384xf32>
    %230 = vector.broadcast %1 : vector<1x384xf32> to vector<2x384xf32>
    %231 = arith.addf %229, %230 : vector<2x384xf32>
    %232 = vector.extract_strided_slice %227 {offsets = [0, 0], sizes = [2, 128], strides = [1, 1]} : vector<2x384xf32> to vector<2x128xf32>
    %233 = vector.extract_strided_slice %231 {offsets = [0, 0], sizes = [2, 128], strides = [1, 1]} : vector<2x384xf32> to vector<2x128xf32>
    %234 = arith.addf %232, %233 : vector<2x128xf32>
    %235 = arith.negf %234 : vector<2x128xf32>
    %236 = math.exp %235 : vector<2x128xf32>
    %cst_54 = arith.constant 1.000000e+00 : f32
    %237 = vector.broadcast %cst_54 : f32 to vector<2x128xf32>
    %238 = arith.addf %237, %236 : vector<2x128xf32>
    %239 = arith.divf %237, %238 : vector<2x128xf32>
    %240 = vector.extract_strided_slice %227 {offsets = [0, 128], sizes = [2, 128], strides = [1, 1]} : vector<2x384xf32> to vector<2x128xf32>
    %241 = vector.extract_strided_slice %231 {offsets = [0, 128], sizes = [2, 128], strides = [1, 1]} : vector<2x384xf32> to vector<2x128xf32>
    %242 = arith.addf %240, %241 : vector<2x128xf32>
    %243 = arith.negf %242 : vector<2x128xf32>
    %244 = math.exp %243 : vector<2x128xf32>
    %cst_55 = arith.constant 1.000000e+00 : f32
    %245 = vector.broadcast %cst_55 : f32 to vector<2x128xf32>
    %246 = arith.addf %245, %244 : vector<2x128xf32>
    %247 = arith.divf %245, %246 : vector<2x128xf32>
    %248 = vector.extract_strided_slice %227 {offsets = [0, 256], sizes = [2, 128], strides = [1, 1]} : vector<2x384xf32> to vector<2x128xf32>
    %249 = vector.extract_strided_slice %231 {offsets = [0, 256], sizes = [2, 128], strides = [1, 1]} : vector<2x384xf32> to vector<2x128xf32>
    %250 = arith.mulf %239, %249 : vector<2x128xf32>
    %251 = arith.addf %248, %250 : vector<2x128xf32>
    %252 = math.tanh %251 : vector<2x128xf32>
    %cst_56 = arith.constant 1.000000e+00 : f32
    %253 = vector.broadcast %cst_56 : f32 to vector<2x128xf32>
    %254 = arith.subf %253, %247 : vector<2x128xf32>
    %255 = arith.mulf %254, %252 : vector<2x128xf32>
    %256 = arith.mulf %247, %220 : vector<2x128xf32>
    %257 = arith.addf %255, %256 : vector<2x128xf32>
    %258 = arith.index_cast %c6_i32 : i32 to index
    %c0_57 = arith.constant 0 : index
    %c0_58 = arith.constant 0 : index
    %259 = vector.load %arg3[%258, %c0_57, %c0_58] : memref<8x2x128xf32, #tpu.memory_space<vmem>>, vector<1x2x128xf32>
    %260 = vector.shape_cast %259 : vector<1x2x128xf32> to vector<2x128xf32>
    %261 = vector.shape_cast %257 : vector<2x128xf32> to vector<1x2x128xf32>
    tpu.vector_store %arg3[%258, %c0_57, %c0_58], %261 {strides = array<i32>} : memref<8x2x128xf32, #tpu.memory_space<vmem>>, vector<1x2x128xf32>,
    %c7_i32 = arith.constant 7 : i32
    %262 = arith.index_cast %c7_i32 : i32 to index
    %c0_59 = arith.constant 0 : index
    %c0_60 = arith.constant 0 : index
    %263 = vector.load %arg0[%262, %c0_59, %c0_60] : memref<8x2x384xf32, #tpu.memory_space<vmem>>, vector<1x2x384xf32>
    %264 = vector.shape_cast %263 : vector<1x2x384xf32> to vector<2x384xf32>
    %265 = arith.truncf %257 : vector<2x128xf32> to vector<2x128xbf16>
    %cst_61 = arith.constant dense<0.000000e+00> : vector<2x384xf32>
    %266 = tpu.matmul %265, %0, %cst_61 {dimension_numbers = #tpu.dot_dimension_numbers<[1], [0], [0], [1], [0, 0, 1, 1], [], []>} : vector<2x128xbf16>, vector<128x384xbf16>, vector<2x384xf32> -> vector<2x384xf32>
    %267 = vector.broadcast %1 : vector<1x384xf32> to vector<2x384xf32>
    %268 = arith.addf %266, %267 : vector<2x384xf32>
    %269 = vector.extract_strided_slice %264 {offsets = [0, 0], sizes = [2, 128], strides = [1, 1]} : vector<2x384xf32> to vector<2x128xf32>
    %270 = vector.extract_strided_slice %268 {offsets = [0, 0], sizes = [2, 128], strides = [1, 1]} : vector<2x384xf32> to vector<2x128xf32>
    %271 = arith.addf %269, %270 : vector<2x128xf32>
    %272 = arith.negf %271 : vector<2x128xf32>
    %273 = math.exp %272 : vector<2x128xf32>
    %cst_62 = arith.constant 1.000000e+00 : f32
    %274 = vector.broadcast %cst_62 : f32 to vector<2x128xf32>
    %275 = arith.addf %274, %273 : vector<2x128xf32>
    %276 = arith.divf %274, %275 : vector<2x128xf32>
    %277 = vector.extract_strided_slice %264 {offsets = [0, 128], sizes = [2, 128], strides = [1, 1]} : vector<2x384xf32> to vector<2x128xf32>
    %278 = vector.extract_strided_slice %268 {offsets = [0, 128], sizes = [2, 128], strides = [1, 1]} : vector<2x384xf32> to vector<2x128xf32>
    %279 = arith.addf %277, %278 : vector<2x128xf32>
    %280 = arith.negf %279 : vector<2x128xf32>
    %281 = math.exp %280 : vector<2x128xf32>
    %cst_63 = arith.constant 1.000000e+00 : f32
    %282 = vector.broadcast %cst_63 : f32 to vector<2x128xf32>
    %283 = arith.addf %282, %281 : vector<2x128xf32>
    %284 = arith.divf %282, %283 : vector<2x128xf32>
    %285 = vector.extract_strided_slice %264 {offsets = [0, 256], sizes = [2, 128], strides = [1, 1]} : vector<2x384xf32> to vector<2x128xf32>
    %286 = vector.extract_strided_slice %268 {offsets = [0, 256], sizes = [2, 128], strides = [1, 1]} : vector<2x384xf32> to vector<2x128xf32>
    %287 = arith.mulf %276, %286 : vector<2x128xf32>
    %288 = arith.addf %285, %287 : vector<2x128xf32>
    %289 = math.tanh %288 : vector<2x128xf32>
    %cst_64 = arith.constant 1.000000e+00 : f32
    %290 = vector.broadcast %cst_64 : f32 to vector<2x128xf32>
    %291 = arith.subf %290, %284 : vector<2x128xf32>
    %292 = arith.mulf %291, %289 : vector<2x128xf32>
    %293 = arith.mulf %284, %257 : vector<2x128xf32>
    %294 = arith.addf %292, %293 : vector<2x128xf32>
    %295 = arith.index_cast %c7_i32 : i32 to index
    %c0_65 = arith.constant 0 : index
    %c0_66 = arith.constant 0 : index
    %296 = vector.load %arg3[%295, %c0_65, %c0_66] : memref<8x2x128xf32, #tpu.memory_space<vmem>>, vector<1x2x128xf32>
    %297 = vector.shape_cast %296 : vector<1x2x128xf32> to vector<2x128xf32>
    %298 = vector.shape_cast %294 : vector<2x128xf32> to vector<1x2x128xf32>
    tpu.vector_store %arg3[%295, %c0_65, %c0_66], %298 {strides = array<i32>} : memref<8x2x128xf32, #tpu.memory_space<vmem>>, vector<1x2x128xf32>,
    %c8_i32 = arith.constant 8 : i32
    %c0_67 = arith.constant 0 : index
    %c0_68 = arith.constant 0 : index
    %299 = vector.load %arg4[%c0_67, %c0_68] : memref<2x128xf32, #tpu.memory_space<vmem>>, vector<2x128xf32>
    tpu.vector_store %arg4[%c0_67, %c0_68], %294 {strides = array<i32>} : memref<2x128xf32, #tpu.memory_space<vmem>>, vector<2x128xf32>,
    return
  }
}

</mosaic_0001>

<bundles_post_ra>
// kernel: _lambda_.3
= control target key start
LH: loop header
LB: loop body
LE: loop exit
PB: predicated region body
PF: predicated region fallthrough
CT: control target
= control target key end

     0   :  { %v332_v3 = vmov 0.0   ;;  %v68_v53 = vlaneseq  ;;  %s552_s1 = inlined_call_operand.vmem [shape: f32[128,384], index: 1, kind: input, shape index: {}]   ;;  %s553_s0 = inlined_call_operand.vmem [shape: f32[32,128], index: 0, kind: input, shape index: {}]   ;;  %s554_s2 = inlined_call_operand.vmem [shape: f32[1,384], index: 2, kind: input, shape index: {}]   ;;  %s555_s3 = inlined_call_operand.vmem [shape: f32[32,384], index: 3, kind: output, shape index: {}]  }
   0x1   :  { %v64_v0 = vld [vmem:[%s552_s1 + $0x170] sm:$0xff]  ;;  %v63_v1 = vld [vmem:[%s552_s1 + $0x168] sm:$0xff]  ;;  %v61_v2 = vld [vmem:[%s552_s1 + $0x158] sm:$0xff]  ;;  %147 = vmatprep.mubr.f32.mxu0 %v332_v3 }
   0x2   :  { %83 = vmatprep.subr.mxu0 %v64_v0  ;;  %v60_v4 = vld [vmem:[%s552_s1 + $0x150] sm:$0xff]  ;;  %v58_v5 = vld [vmem:[%s552_s1 + $0x140] sm:$0xff]  ;;  %v65_v6 = vld [vmem:[%s552_s1 + $0x178] sm:$0xff]  ;;  %v69_v54 = vshrl.u32 %v68_v53, 7 }
   0x3   :  { %84 = vmatpush1.msra.mxu0 %v63_v1  ;;  %v57_v7 = vld [vmem:[%s552_s1 + $0x138] sm:$0xff]  ;;  %293 = vmatprep.subr.mxu1 %v65_v6  ;;  %v62_v8 = vld [vmem:[%s552_s1 + $0x160] sm:$0xff]  ;;  %v55_v9 = vld [vmem:[%s552_s1 + $0x128] sm:$0xff] }
   0x4   :  { %85 = vmatprep.subr.mxu0 %v61_v2  ;;  %294 = vmatpush3.msra.mxu1 %v65_v6  ;;  %v59_v10 = vld [vmem:[%s552_s1 + $0x148] sm:$0xff]  ;;  %v54_v11 = vld [vmem:[%s552_s1 + $0x120] sm:$0xff]  ;;  %v52_v12 = vld [vmem:[%s552_s1 + $0x110] sm:$0xff]  ;;  %v70_v55 = vsub.s32 0, %v69_v54  ;;  %v74_v57 = vsub.s32 1, %v69_v54  ;;  %v78_v58 = vsub.s32 2, %v69_v54 }
   0x5   :  { %86 = vmatpush1.msra.mxu0 %v60_v4  ;;  %295 = vmatprep.subr.mxu1 %v62_v8  ;;  %v56_v13 = vld [vmem:[%s552_s1 + $0x130] sm:$0xff]  ;;  %v51_v14 = vld [vmem:[%s552_s1 + $0x108] sm:$0xff]  ;;  %v49_v15 = vld [vmem:[%s552_s1 + $0xf8] sm:$0xff] }
   0x6   :  { %87 = vmatprep.subr.mxu0 %v58_v5  ;;  %296 = vmatpush3.msra.mxu1 %v62_v8  ;;  %v53_v16 = vld [vmem:[%s552_s1 + $0x118] sm:$0xff]  ;;  %v48_v17 = vld [vmem:[%s552_s1 + $0xf0] sm:$0xff]  ;;  %v46_v18 = vld [vmem:[%s552_s1 + $0xe0] sm:$0xff] }
   0x7   :  { %88 = vmatpush1.msra.mxu0 %v57_v7  ;;  %297 = vmatprep.subr.mxu1 %v59_v10  ;;  %v50_v19 = vld [vmem:[%s552_s1 + $0x100] sm:$0xff]  ;;  %v45_v20 = vld [vmem:[%s552_s1 + $0xd8] sm:$0xff]  ;;  %v43_v21 = vld [vmem:[%s552_s1 + $0xc8] sm:$0xff] }
   0x8   :  { %89 = vmatprep.subr.mxu0 %v55_v9  ;;  %298 = vmatpush3.msra.mxu1 %v59_v10  ;;  %v47_v22 = vld [vmem:[%s552_s1 + $0xe8] sm:$0xff]  ;;  %v42_v23 = vld [vmem:[%s552_s1 + $0xc0] sm:$0xff]  ;;  %v40_v24 = vld [vmem:[%s552_s1 + $0xb0] sm:$0xff] }
   0x9   :  { %90 = vmatpush1.msra.mxu0 %v54_v11  ;;  %299 = vmatprep.subr.mxu1 %v56_v13  ;;  %v44_v25 = vld [vmem:[%s552_s1 + $0xd0] sm:$0xff]  ;;  %v39_v26 = vld [vmem:[%s552_s1 + $0xa8] sm:$0xff]  ;;  %v37_v27 = vld [vmem:[%s552_s1 + $0x98] sm:$0xff] }
   0xa   :  { %91 = vmatprep.subr.mxu0 %v52_v12  ;;  %300 = vmatpush3.msra.mxu1 %v56_v13  ;;  %v41_v28 = vld [vmem:[%s552_s1 + $0xb8] sm:$0xff]  ;;  %v36_v29 = vld [vmem:[%s552_s1 + $0x90] sm:$0xff]  ;;  %v34_v30 = vld [vmem:[%s552_s1 + $0x80] sm:$0xff] }
   0xb   :  { %92 = vmatpush1.msra.mxu0 %v51_v14  ;;  %301 = vmatprep.subr.mxu1 %v53_v16  ;;  %v38_v31 = vld [vmem:[%s552_s1 + $0xa0] sm:$0xff]  ;;  %v33_v32 = vld [vmem:[%s552_s1 + $0x78] sm:$0xff]  ;;  %v31_v33 = vld [vmem:[%s552_s1 + $0x68] sm:$0xff] }
   0xc   :  { %93 = vmatprep.subr.mxu0 %v49_v15  ;;  %302 = vmatpush3.msra.mxu1 %v53_v16  ;;  %v35_v34 = vld [vmem:[%s552_s1 + $0x88] sm:$0xff]  ;;  %v30_v35 = vld [vmem:[%s552_s1 + $0x60] sm:$0xff]  ;;  %v28_v36 = vld [vmem:[%s552_s1 + $0x50] sm:$0xff] }
   0xd   :  { %94 = vmatpush1.msra.mxu0 %v48_v17  ;;  %303 = vmatprep.subr.mxu1 %v50_v19  ;;  %v32_v37 = vld [vmem:[%s552_s1 + $0x70] sm:$0xff]  ;;  %v27_v38 = vld [vmem:[%s552_s1 + $0x48] sm:$0xff]  ;;  %v25_v39 = vld [vmem:[%s552_s1 + $0x38] sm:$0xff] }
   0xe   :  { %95 = vmatprep.subr.mxu0 %v46_v18  ;;  %304 = vmatpush3.msra.mxu1 %v50_v19  ;;  %v29_v40 = vld [vmem:[%s552_s1 + $0x58] sm:$0xff]  ;;  %v24_v41 = vld [vmem:[%s552_s1 + $0x30] sm:$0xff]  ;;  %v22_v42 = vld [vmem:[%s552_s1 + $0x20] sm:$0xff] }
   0xf   :  { %96 = vmatpush1.msra.mxu0 %v45_v20  ;;  %305 = vmatprep.subr.mxu1 %v47_v22  ;;  %v26_v43 = vld [vmem:[%s552_s1 + $0x40] sm:$0xff]  ;;  %v21_v44 = vld [vmem:[%s552_s1 + $0x18] sm:$0xff]  ;;  %v19_v45 = vld [vmem:[%s552_s1 + $0x8] sm:$0xff] }
  0x10   :  { %97 = vmatprep.subr.mxu0 %v43_v21  ;;  %306 = vmatpush3.msra.mxu1 %v47_v22  ;;  %v23_v46 = vld [vmem:[%s552_s1 + $0x28] sm:$0xff]  ;;  %v18_v47 = vld [vmem:[%s552_s1] sm:$0xff]  ;;  %v20_v49 = vld [vmem:[%s552_s1 + $0x10] sm:$0xff] }
  0x11   :  { %98 = vmatpush1.msra.mxu0 %v42_v23  ;;  %307 = vmatprep.subr.mxu1 %v44_v25  ;;  %v14_v48 = vld [vmem:[%s553_s0] sm:$0xff]  ;;  %v15_v50 = vld [vmem:[%s553_s0 + $0x8] sm:$0xff]  ;;  %v16_v51 = vld [vmem:[%s553_s0 + $0x10] sm:$0xff] }
  0x12   :  { %99 = vmatprep.subr.mxu0 %v40_v24  ;;  %308 = vmatpush3.msra.mxu1 %v44_v25  ;;  %v17_v52 = vld [vmem:[%s553_s0 + $0x18] sm:$0xff]  ;;  %v66_v56 = vld [vmem:[%s554_s2] sm:$0x7] }
  0x13   :  { %100 = vmatpush1.msra.mxu0 %v39_v26  ;;  %309 = vmatprep.subr.mxu1 %v41_v28  ;;  %v71_v59 = vrot.slane %v66_v56, %v70_v55  ;;  %v75_v60 = vrot.slane %v66_v56, %v74_v57  ;;  %v79_v62 = vrot.slane %v66_v56, %v78_v58 }
  0x14   :  { %101 = vmatprep.subr.mxu0 %v37_v27  ;;  %310 = vmatpush3.msra.mxu1 %v41_v28 }
  0x15   :  { %102 = vmatpush1.msra.mxu0 %v36_v29  ;;  %311 = vmatprep.subr.mxu1 %v38_v31 }
  0x16   :  { %103 = vmatprep.subr.mxu0 %v34_v30  ;;  %312 = vmatpush3.msra.mxu1 %v38_v31 }
  0x17   :  { %104 = vmatpush1.msra.mxu0 %v33_v32  ;;  %313 = vmatprep.subr.mxu1 %v35_v34 }
  0x18   :  { %105 = vmatprep.subr.mxu0 %v31_v33  ;;  %314 = vmatpush3.msra.mxu1 %v35_v34 }
  0x19   :  { %106 = vmatpush1.msra.mxu0 %v30_v35  ;;  %315 = vmatprep.subr.mxu1 %v32_v37 }
  0x1a   :  { %107 = vmatprep.subr.mxu0 %v28_v36  ;;  %316 = vmatpush3.msra.mxu1 %v32_v37 }
  0x1b   :  { %108 = vmatpush1.msra.mxu0 %v27_v38  ;;  %317 = vmatprep.subr.mxu1 %v29_v40 }
  0x1c   :  { %109 = vmatprep.subr.mxu0 %v25_v39  ;;  %318 = vmatpush3.msra.mxu1 %v29_v40 }
  0x1d   :  { %110 = vmatpush1.msra.mxu0 %v24_v41  ;;  %319 = vmatprep.subr.mxu1 %v26_v43 }
  0x1e   :  { %111 = vmatprep.subr.mxu0 %v22_v42  ;;  %320 = vmatpush3.msra.mxu1 %v26_v43 }
  0x1f   :  { %112 = vmatpush1.msra.mxu0 %v21_v44  ;;  %321 = vmatprep.subr.mxu1 %v23_v46 }
  0x20   :  { %113 = vmatprep.subr.mxu0 %v19_v45  ;;  %322 = vmatpush3.msra.mxu1 %v23_v46 }
  0x21   :  { %114 = vmatpush1.msra.mxu0 %v18_v47  ;;  %323 = vmatprep.subr.mxu1 %v20_v49 }
  0x22   :  { %148 = vmatmul.mubr.f32.vlgmr.msra.gmra.mxu0 %v14_v48  ;;  %324 = vmatpush3.msra.mxu1 %v20_v49 }
  0x23   :  { %153 = vmatprep.mubr.f32.mxu0 %v332_v3  ;;  %325 = vmatprep.mubr.f32.mxu1 %v14_v48 }
  0x24   :  { %326 = vmatmul.mubr.f32.vlgmr.msra.gmra.mxu1 %v15_v50 }
  0x25   :  { %328 = vmatprep.mubr.f32.mxu1 %v16_v51 }
  0x26   :  { %154 = vmatmul.mubr.f32.gmra.mxu0 %v15_v50 }
  0x27   :  { %159 = vmatprep.mubr.f32.mxu0 %v332_v3 }
  0x28   :  { %329 = vmatmul.mubr.f32.gmra.mxu1 %v17_v52 }
  0x2a   :  { %160 = vmatmul.mubr.f32.gmra.mxu0 %v16_v51 }
  0x2b   :  { %165 = vmatprep.mubr.f32.mxu0 %v332_v3 }
  0x2e   :  { %166 = vmatmul.mubr.f32.gmra.mxu0 %v17_v52 }
  0xe2   :  { %v149_v61 = vpop.f32.mrf.mxu0 }
  0xe3   :  { %v150_v63 = vadd.f32 %v149_v61, %v71_v59 }
  0xe4   :  { %v151_v0 = vpop.f32.mrf.mxu0  ;;  %v327_v2 = vpop.f32.mrf.mxu1 }
  0xe5   :  { %257 = vst [vmem:[%s555_s3] sm:$0xff] %v150_v63  ;;  %v152_v1 = vadd.f32 %v151_v0, %v75_v60  ;;  %v244_v4 = vadd.f32 %v327_v2, %v79_v62 }
  0xe6   :  { %v155_v3 = vpop.f32.mrf.mxu0  ;;  %v238_v6 = vpop.f32.mrf.mxu1 }
  0xe7   :  { %258 = vst [vmem:[%s555_s3 + $0x8] sm:$0xff] %v152_v1  ;;  %v156_v5 = vadd.f32 %v155_v3, %v71_v59  ;;  %262 = vst [vmem:[%s555_s3 + $0x28] sm:$0xff] %v244_v4  ;;  %v239_v8 = vadd.f32 %v238_v6, %v79_v62 }
  0xe8   :  { %v157_v7 = vpop.f32.mrf.mxu0  ;;  %v330_v10 = vpop.f32.mrf.mxu1 }
  0xe9   :  { %260 = vst [vmem:[%s555_s3 + $0x18] sm:$0xff] %v156_v5  ;;  %v158_v9 = vadd.f32 %v157_v7, %v75_v60  ;;  %259 = vst [vmem:[%s555_s3 + $0x10] sm:$0xff] %v239_v8  ;;  %v254_v12 = vadd.f32 %v330_v10, %v79_v62 }
  0xea   :  { %v161_v11 = vpop.f32.mrf.mxu0  ;;  %v248_v14 = vpop.f32.mrf.mxu1 }
  0xeb   :  { %261 = vst [vmem:[%s555_s3 + $0x20] sm:$0xff] %v158_v9  ;;  %v162_v13 = vadd.f32 %v161_v11, %v71_v59  ;;  %268 = vst [vmem:[%s555_s3 + $0x58] sm:$0xff] %v254_v12  ;;  %v249_v16 = vadd.f32 %v248_v14, %v79_v62 }
  0xec   :  { %v163_v15 = vpop.f32.mrf.mxu0 }
  0xed   :  { %263 = vst [vmem:[%s555_s3 + $0x30] sm:$0xff] %v162_v13  ;;  %v164_v17 = vadd.f32 %v163_v15, %v75_v60  ;;  %265 = vst [vmem:[%s555_s3 + $0x40] sm:$0xff] %v249_v16 }
  0xee   :  { %v167_v18 = vpop.f32.mrf.mxu0 }
  0xef   :  { %264 = vst [vmem:[%s555_s3 + $0x38] sm:$0xff] %v164_v17  ;;  %v168_v19 = vadd.f32 %v167_v18, %v71_v59 }
  0xf0   :  { %v169_v20 = vpop.f32.mrf.mxu0 }
  0xf1   :  { %266 = vst [vmem:[%s555_s3 + $0x48] sm:$0xff] %v168_v19  ;;  %v170_v21 = vadd.f32 %v169_v20, %v75_v60 }
  0xf3   :  { %267 = vst [vmem:[%s555_s3 + $0x50] sm:$0xff] %v170_v21 }

// kernel: _lambda_.4
= control target key start
LH: loop header
LB: loop body
LE: loop exit
PB: predicated region body
PF: predicated region fallthrough
CT: control target
= control target key end

     0   :  { %v302_v0 = vmov 0   ;;  %v303_v3 = vmov 0.0   ;;  %v15_v52 = vlaneseq  ;;  %v304_v55 = vmov 1.0   ;;  %s490_s0 = inlined_call_operand.vmem [shape: s32[16,1], index: 0, kind: input, shape index: {}]   ;;  %s491_s1 = inlined_call_operand.vmem [shape: f32[128,384], index: 1, kind: input, shape index: {}]   ;;  %s492_s2 = inlined_call_operand.vmem [shape: f32[16,384], index: 2, kind: output, shape index: {}]  }
   0x1   :  { %301 = vset.pattern.permute.xlu0 %v302_v0  ;;  %v13_v1 = vld [vmem:[%s490_s0] sm:$0xff]  ;;  %v75_v2 = vld [vmem:[%s491_s1 + $0x170] sm:$0xff]  ;;  %141 = vmatprep.mubr.f32.mxu0 %v303_v3  ;;  %v74_v4 = vld [vmem:[%s491_s1 + $0x168] sm:$0xff] }
   0x2   :  { %18 = vperm.xlu0 %301, %v13_v1   ;;  %77 = vmatprep.subr.mxu0 %v75_v2  ;;  %v72_v5 = vld [vmem:[%s491_s1 + $0x158] sm:$0xff]  ;;  %v71_v6 = vld [vmem:[%s491_s1 + $0x150] sm:$0xff]  ;;  %v14_v7 = vld [vmem:[%s490_s0 + $0x8] sm:$0xff]  ;;  %v16_v53 = vand.u32 127, %v15_v52 }
   0x3   :  { %78 = vmatpush1.msra.mxu0 %v74_v4  ;;  %v69_v8 = vld [vmem:[%s491_s1 + $0x140] sm:$0xff]  ;;  %v76_v9 = vld [vmem:[%s491_s1 + $0x178] sm:$0xff]  ;;  %v66_v12 = vld [vmem:[%s491_s1 + $0x128] sm:$0xff] }
   0x4   :  { %79 = vmatprep.subr.mxu0 %v72_v5  ;;  %263 = vmatprep.subr.mxu1 %v76_v9  ;;  %v68_v10 = vld [vmem:[%s491_s1 + $0x138] sm:$0xff]  ;;  %v73_v11 = vld [vmem:[%s491_s1 + $0x160] sm:$0xff]  ;;  %v70_v14 = vld [vmem:[%s491_s1 + $0x148] sm:$0xff] }
   0x5   :  { %80 = vmatpush1.msra.mxu0 %v71_v6  ;;  %264 = vmatpush3.msra.mxu1 %v76_v9  ;;  %v65_v13 = vld [vmem:[%s491_s1 + $0x120] sm:$0xff]  ;;  %v63_v15 = vld [vmem:[%s491_s1 + $0x110] sm:$0xff]  ;;  %v62_v16 = vld [vmem:[%s491_s1 + $0x108] sm:$0xff] }
   0x6   :  { %21 = vperm.xlu0 %301, %v14_v7   ;;  %81 = vmatprep.subr.mxu0 %v69_v8  ;;  %v67_v17 = vld [vmem:[%s491_s1 + $0x130] sm:$0xff]  ;;  %v60_v18 = vld [vmem:[%s491_s1 + $0xf8] sm:$0xff]  ;;  %v57_v21 = vld [vmem:[%s491_s1 + $0xe0] sm:$0xff] }
   0x7   :  { %82 = vmatpush1.msra.mxu0 %v68_v10  ;;  %265 = vmatprep.subr.mxu1 %v73_v11  ;;  %v59_v19 = vld [vmem:[%s491_s1 + $0xf0] sm:$0xff]  ;;  %v64_v20 = vld [vmem:[%s491_s1 + $0x118] sm:$0xff]  ;;  %v61_v23 = vld [vmem:[%s491_s1 + $0x100] sm:$0xff] }
   0x8   :  { %83 = vmatprep.subr.mxu0 %v66_v12  ;;  %266 = vmatpush3.msra.mxu1 %v73_v11  ;;  %v56_v22 = vld [vmem:[%s491_s1 + $0xd8] sm:$0xff]  ;;  %v54_v24 = vld [vmem:[%s491_s1 + $0xc8] sm:$0xff]  ;;  %v53_v25 = vld [vmem:[%s491_s1 + $0xc0] sm:$0xff] }
   0x9   :  { %84 = vmatpush1.msra.mxu0 %v65_v13  ;;  %267 = vmatprep.subr.mxu1 %v70_v14  ;;  %v58_v26 = vld [vmem:[%s491_s1 + $0xe8] sm:$0xff]  ;;  %v51_v27 = vld [vmem:[%s491_s1 + $0xb0] sm:$0xff]  ;;  %v48_v30 = vld [vmem:[%s491_s1 + $0x98] sm:$0xff] }
   0xa   :  { %85 = vmatprep.subr.mxu0 %v63_v15  ;;  %268 = vmatpush3.msra.mxu1 %v70_v14  ;;  %v50_v28 = vld [vmem:[%s491_s1 + $0xa8] sm:$0xff]  ;;  %v55_v29 = vld [vmem:[%s491_s1 + $0xd0] sm:$0xff]  ;;  %v52_v32 = vld [vmem:[%s491_s1 + $0xb8] sm:$0xff] }
   0xb   :  { %86 = vmatpush1.msra.mxu0 %v62_v16  ;;  %269 = vmatprep.subr.mxu1 %v67_v17  ;;  %v47_v31 = vld [vmem:[%s491_s1 + $0x90] sm:$0xff]  ;;  %v45_v33 = vld [vmem:[%s491_s1 + $0x80] sm:$0xff]  ;;  %v44_v34 = vld [vmem:[%s491_s1 + $0x78] sm:$0xff] }
   0xc   :  { %87 = vmatprep.subr.mxu0 %v60_v18  ;;  %270 = vmatpush3.msra.mxu1 %v67_v17  ;;  %v49_v35 = vld [vmem:[%s491_s1 + $0xa0] sm:$0xff]  ;;  %v42_v36 = vld [vmem:[%s491_s1 + $0x68] sm:$0xff]  ;;  %v39_v39 = vld [vmem:[%s491_s1 + $0x50] sm:$0xff] }
   0xd   :  { %88 = vmatpush1.msra.mxu0 %v59_v19  ;;  %271 = vmatprep.subr.mxu1 %v64_v20  ;;  %v41_v37 = vld [vmem:[%s491_s1 + $0x60] sm:$0xff]  ;;  %v46_v38 = vld [vmem:[%s491_s1 + $0x88] sm:$0xff]  ;;  %v43_v41 = vld [vmem:[%s491_s1 + $0x70] sm:$0xff] }
   0xe   :  { %89 = vmatprep.subr.mxu0 %v57_v21  ;;  %272 = vmatpush3.msra.mxu1 %v64_v20  ;;  %v38_v40 = vld [vmem:[%s491_s1 + $0x48] sm:$0xff]  ;;  %v36_v42 = vld [vmem:[%s491_s1 + $0x38] sm:$0xff]  ;;  %v35_v43 = vld [vmem:[%s491_s1 + $0x30] sm:$0xff] }
   0xf   :  { %90 = vmatpush1.msra.mxu0 %v56_v22  ;;  %273 = vmatprep.subr.mxu1 %v61_v23  ;;  %v40_v44 = vld [vmem:[%s491_s1 + $0x58] sm:$0xff]  ;;  %v33_v45 = vld [vmem:[%s491_s1 + $0x20] sm:$0xff]  ;;  %v30_v48 = vld [vmem:[%s491_s1 + $0x8] sm:$0xff] }
  0x10   :  { %91 = vmatprep.subr.mxu0 %v54_v24  ;;  %274 = vmatpush3.msra.mxu1 %v61_v23  ;;  %v32_v46 = vld [vmem:[%s491_s1 + $0x18] sm:$0xff]  ;;  %v37_v47 = vld [vmem:[%s491_s1 + $0x40] sm:$0xff]  ;;  %v34_v50 = vld [vmem:[%s491_s1 + $0x28] sm:$0xff] }
  0x11   :  { %92 = vmatpush1.msra.mxu0 %v53_v25  ;;  %275 = vmatprep.subr.mxu1 %v58_v26  ;;  %v29_v49 = vld [vmem:[%s491_s1] sm:$0xff]  ;;  %v31_v51 = vld [vmem:[%s491_s1 + $0x10] sm:$0xff] }
  0x12   :  { %93 = vmatprep.subr.mxu0 %v51_v27  ;;  %276 = vmatpush3.msra.mxu1 %v58_v26 }
  0x13   :  { %94 = vmatpush1.msra.mxu0 %v50_v28  ;;  %277 = vmatprep.subr.mxu1 %v55_v29 }
  0x14   :  { %95 = vmatprep.subr.mxu0 %v48_v30  ;;  %278 = vmatpush3.msra.mxu1 %v55_v29 }
  0x15   :  { %96 = vmatpush1.msra.mxu0 %v47_v31  ;;  %279 = vmatprep.subr.mxu1 %v52_v32 }
  0x16   :  { %97 = vmatprep.subr.mxu0 %v45_v33  ;;  %280 = vmatpush3.msra.mxu1 %v52_v32 }
  0x17   :  { %98 = vmatpush1.msra.mxu0 %v44_v34  ;;  %281 = vmatprep.subr.mxu1 %v49_v35 }
  0x18   :  { %99 = vmatprep.subr.mxu0 %v42_v36  ;;  %282 = vmatpush3.msra.mxu1 %v49_v35 }
  0x19   :  { %100 = vmatpush1.msra.mxu0 %v41_v37  ;;  %283 = vmatprep.subr.mxu1 %v46_v38 }
  0x1a   :  { %101 = vmatprep.subr.mxu0 %v39_v39  ;;  %284 = vmatpush3.msra.mxu1 %v46_v38 }
  0x1b   :  { %102 = vmatpush1.msra.mxu0 %v38_v40  ;;  %285 = vmatprep.subr.mxu1 %v43_v41 }
  0x1c   :  { %103 = vmatprep.subr.mxu0 %v36_v42  ;;  %286 = vmatpush3.msra.mxu1 %v43_v41 }
  0x1d   :  { %104 = vmatpush1.msra.mxu0 %v35_v43  ;;  %287 = vmatprep.subr.mxu1 %v40_v44 }
  0x1e   :  { %105 = vmatprep.subr.mxu0 %v33_v45  ;;  %288 = vmatpush3.msra.mxu1 %v40_v44 }
  0x1f   :  { %106 = vmatpush1.msra.mxu0 %v32_v46  ;;  %289 = vmatprep.subr.mxu1 %v37_v47 }
  0x20   :  { %107 = vmatprep.subr.mxu0 %v30_v48  ;;  %290 = vmatpush3.msra.mxu1 %v37_v47 }
  0x21   :  { %108 = vmatpush1.msra.mxu0 %v29_v49  ;;  %291 = vmatprep.subr.mxu1 %v34_v50 }
  0x22   :  { %292 = vmatpush3.msra.mxu1 %v34_v50 }
  0x23   :  { %293 = vmatprep.subr.mxu1 %v31_v51 }
  0x24   :  { %294 = vmatpush3.msra.mxu1 %v31_v51 }
  0x7d   :  { %v19_v54 = vpop.permute.xlu0 %18 }
  0x7e   :  { %vm23_vm0 = vcmp.eq.s32.totalorder %v16_v53, %v19_v54 }
  0x7f   :  { %241 = vmatmul.mubr.msk.f32.vlgmr.msra.gmra.mxu0 %vm23_vm0, %v304_v55  ;;  %295 = vmatprep.mubr.msk.f32.mxu1 %vm23_vm0, %v304_v55 }
  0x80   :  { %147 = vmatprep.mubr.f32.mxu0 %v303_v3 }
  0x81   :  { %v22_v56 = vpop.permute.xlu0 %21 }
  0x82   :  { %vm24_vm1 = vcmp.eq.s32.totalorder %v16_v53, %v22_v56 }
  0x83   :  { %242 = vmatmul.mubr.msk.f32.gmra.mxu0 %vm24_vm1, %v304_v55  ;;  %296 = vmatmul.mubr.msk.f32.vlgmr.msra.gmra.mxu1 %vm24_vm1, %v304_v55 }
 0x13f   :  { %v143_v57 = vpop.f32.mrf.mxu0 }
 0x140   :  { %229 = vst [vmem:[%s492_s2] sm:$0xff] %v143_v57 }
 0x141   :  { %v145_v58 = vpop.f32.mrf.mxu0 }
 0x142   :  { %230 = vst [vmem:[%s492_s2 + $0x8] sm:$0xff] %v145_v58 }
 0x143   :  { %v149_v59 = vpop.f32.mrf.mxu0  ;;  %v297_v60 = vpop.f32.mrf.mxu1 }
 0x144   :  { %232 = vst [vmem:[%s492_s2 + $0x18] sm:$0xff] %v149_v59  ;;  %234 = vst [vmem:[%s492_s2 + $0x28] sm:$0xff] %v297_v60 }
 0x145   :  { %v151_v61 = vpop.f32.mrf.mxu0  ;;  %v220_v62 = vpop.f32.mrf.mxu1 }
 0x146   :  { %233 = vst [vmem:[%s492_s2 + $0x20] sm:$0xff] %v151_v61  ;;  %231 = vst [vmem:[%s492_s2 + $0x10] sm:$0xff] %v220_v62 }

// kernel: _lambda_.5
= control target key start
LH: loop header
LB: loop body
LE: loop exit
PB: predicated region body
PF: predicated region fallthrough
CT: control target
= control target key end

     0   :  { %v1543_v2 = vmov 0.0   ;;  %v1544_v3 = vmov 0   ;;  %vm1545_vm0 = vmmov 0   ;;  %s2118_s0 = inlined_call_operand.vmem [shape: f32[8,2,384], index: 0, kind: input, shape index: {}]   ;;  %s2119_s1 = inlined_call_operand.vmem [shape: bf16[128,384], index: 1, kind: input, shape index: {}]   ;;  %s2120_s2 = inlined_call_operand.vmem [shape: f32[1,384], index: 2, kind: input, shape index: {}]   ;;  %s2121_s3 = inlined_call_operand.vmem [shape: f32[8,2,128], index: 3, kind: output, shape index: {0}]   ;;  %s2122_s4 = inlined_call_operand.hbm [shape: f32[2,128], index: 4, kind: output, shape index: {1}]  }
   0x1   :  { %v1575_v0 = vld [vmem:[%s2119_s1 + $0xac] ss:$12 sps:$4 sm:$0xff]   ;;  %v1580_v1 = vld [vmem:[%s2119_s1 + $0xa8] ss:$12 sps:$4 sm:$0xff]   ;;  %1233 = vmatprep.subr.bf16.mxu1 %v1543_v2  ;;  %228 = vmatprep.mubr.bf16.mxu0 %v1544_v3  ;;  %v1596_v5 = vld [vmem:[%s2119_s1 + $0x90] ss:$12 sps:$4 sm:$0xff]  }
   0x2   :  { %196 = vmatprep.subr.bf16.mxu0 %v1575_v0  ;;  %v1588_v4 = vld [vmem:[%s2119_s1 + $0x94] ss:$12 sps:$4 sm:$0xff]   ;;  %1249 = vmatprep.mubr.msk.bf16.mxu1 %vm1545_vm0, %v1543_v2  ;;  %v1602_v6 = vld [vmem:[%s2119_s1 + $0x7c] ss:$12 sps:$4 sm:$0xff]   ;;  %v1608_v7 = vld [vmem:[%s2119_s1 + $0x78] ss:$12 sps:$4 sm:$0xff]  }
   0x3   :  { %197 = vmatpush1.bf16.msra.mxu0 %v1580_v1  ;;  %v1614_v8 = vld [vmem:[%s2119_s1 + $0x64] ss:$12 sps:$4 sm:$0xff]   ;;  %v1619_v9 = vld [vmem:[%s2119_s1 + $0x60] ss:$12 sps:$4 sm:$0xff]   ;;  %v1644_v13 = vld [vmem:[%s2119_s1 + $0x48] ss:$12 sps:$4 sm:$0xff]  }
   0x4   :  { %198 = vmatprep.subr.bf16.mxu0 %v1588_v4  ;;  %v1625_v10 = vld [vmem:[%s2119_s1 + $0xb0] ss:$12 sps:$4 sm:$0xff]   ;;  %v1631_v11 = vld [vmem:[%s2119_s1 + $0x4c] ss:$12 sps:$4 sm:$0xff]   ;;  %v1650_v14 = vld [vmem:[%s2119_s1 + $0x34] ss:$12 sps:$4 sm:$0xff]  }
   0x5   :  { %1234 = vmatpush3.bf16.msra.mxu1 %v1625_v10  ;;  %v1637_v12 = vld [vmem:[%s2119_s1 + $0x98] ss:$12 sps:$4 sm:$0xff]   ;;  %v1656_v15 = vld [vmem:[%s2119_s1 + $0x80] ss:$12 sps:$4 sm:$0xff]   ;;  %v1663_v16 = vld [vmem:[%s2119_s1 + $0x30] ss:$12 sps:$4 sm:$0xff]  }
   0x6   :  { %1235 = vmatprep.subr.bf16.mxu1 %v1543_v2 }
   0x7   :  { %199 = vmatpush1.bf16.msra.mxu0 %v1596_v5 }
   0x8   :  { %200 = vmatprep.subr.bf16.mxu0 %v1602_v6 }
   0x9   :  { %1236 = vmatpush3.bf16.msra.mxu1 %v1637_v12 }
   0xa   :  { %1237 = vmatprep.subr.bf16.mxu1 %v1543_v2 }
   0xb   :  { %201 = vmatpush1.bf16.msra.mxu0 %v1608_v7 }
   0xc   :  { %202 = vmatprep.subr.bf16.mxu0 %v1614_v8 }
   0xf   :  { %203 = vmatpush1.bf16.msra.mxu0 %v1619_v9 }
  0x10   :  { %204 = vmatprep.subr.bf16.mxu0 %v1631_v11 }
  0x13   :  { %205 = vmatpush1.bf16.msra.mxu0 %v1644_v13 }
  0x14   :  { %10 = vsyncpa [#allocation3], 0  ;;  %206 = vmatprep.subr.bf16.mxu0 %v1650_v14  ;;  %v1669_v17 = vld [vmem:[%s2119_s1 + $0x1c] ss:$12 sps:$4 sm:$0xff]   ;;  %1238 = vmatpush3.bf16.msra.mxu1 %v1656_v15  ;;  %v1682_v19 = vld [vmem:[%s2119_s1 + $0x18] ss:$12 sps:$4 sm:$0xff]   ;;  %v53_v26 = vlaneseq }
  0x15   :  { %v1675_v18 = vld [vmem:[%s2119_s1 + $0x68] ss:$12 sps:$4 sm:$0xff]   ;;  %1239 = vmatprep.subr.bf16.mxu1 %v1543_v2  ;;  %v1688_v20 = vld [vmem:[%s2119_s1 + $0x4] ss:$12 sps:$4 sm:$0xff]   ;;  %v1701_v22 = vld [vmem:[%s2119_s1] ss:$12 sps:$4 sm:$0xff]  }
  0x16   :  { %v1694_v21 = vld [vmem:[%s2119_s1 + $0x50] ss:$12 sps:$4 sm:$0xff]   ;;  %v1708_v23 = vld [vmem:[%s2119_s1 + $0x38] ss:$12 sps:$4 sm:$0xff]   ;;  %v1717_v24 = vld [vmem:[%s2119_s1 + $0x20] ss:$12 sps:$4 sm:$0xff]  }
  0x17   :  { %207 = vmatpush1.bf16.msra.mxu0 %v1663_v16  ;;  %v1728_v25 = vld [vmem:[%s2119_s1 + $0x8] ss:$12 sps:$4 sm:$0xff]   ;;  %v54_v27 = vshrl.u32 %v53_v26, 7  ;;  %v50_v29 = vld [vmem:[%s2120_s2] sm:$0x7] }
  0x18   :  { %208 = vmatprep.subr.bf16.mxu0 %v1669_v17  ;;  %1240 = vmatpush3.bf16.msra.mxu1 %v1675_v18  ;;  %v51_v32 = vld [vmem:[%s2118_s0] sm:$0x3f] }
  0x19   :  { %1241 = vmatprep.subr.bf16.mxu1 %v1543_v2  ;;  %v55_v28 = vsub.s32 0, %v54_v27  ;;  %v59_v31 = vsub.s32 1, %v54_v27  ;;  %v285_v41 = vrot.slane %v51_v32, 2  ;;  %v63_v51 = vsub.s32 2, %v54_v27 }
  0x1a   :  { %v295_v56 = vrot.slane %v51_v32, 4 }
  0x1b   :  { %209 = vmatpush1.bf16.msra.mxu0 %v1682_v19  ;;  %v1769_v30 = vrot.slane %v50_v29, %v55_v28  ;;  %v1775_v35 = vrot.slane %v50_v29, %v59_v31  ;;  %v1778_v52 = vrot.slane %v50_v29, %v63_v51  ;;  %v1133_v29 = vld [vmem:[%s2118_s0 + $0x6] sm:$0x3f] }
  0x1c   :  { %210 = vmatprep.subr.bf16.mxu0 %v1688_v20  ;;  %1242 = vmatpush3.bf16.msra.mxu1 %v1694_v21 }
  0x1d   :  { %1243 = vmatprep.subr.bf16.mxu1 %v1543_v2 }
  0x1f   :  { %211 = vmatpush1.bf16.msra.mxu0 %v1701_v22 }
  0x20   :  { %307 = vmatprep.subr.bf16.mxu0 %v1575_v0  ;;  %1244 = vmatpush3.bf16.msra.mxu1 %v1708_v23 }
  0x21   :  { %1245 = vmatprep.subr.bf16.mxu1 %v1543_v2 }
  0x22   :  { %229 = vmatmul.mubr.bf16.vlgmr.msra.gmra.mxu0 %v1544_v3 }
  0x23   :  { %308 = vmatpush1.bf16.msra.mxu0 %v1580_v1  ;;  %339 = vmatprep.mubr.bf16.mxu0 %v1544_v3 }
  0x24   :  { %309 = vmatprep.subr.bf16.mxu0 %v1588_v4  ;;  %1246 = vmatpush3.bf16.msra.mxu1 %v1717_v24 }
  0x25   :  { %1247 = vmatprep.subr.bf16.mxu1 %v1543_v2 }
  0x27   :  { %310 = vmatpush1.bf16.msra.mxu0 %v1596_v5 }
  0x28   :  { %311 = vmatprep.subr.bf16.mxu0 %v1602_v6  ;;  %1248 = vmatpush3.bf16.msra.mxu1 %v1728_v25 }
  0x29   :  { %1253 = vmatprep.subr.bf16.mxu1 %v1543_v2 }
  0x2b   :  { %312 = vmatpush1.bf16.msra.mxu0 %v1608_v7  ;;  %1250 = vmatmul.mubr.bf16.vlgmr.msra.gmra.mxu1 %v1544_v3 }
  0x2c   :  { %313 = vmatprep.subr.bf16.mxu0 %v1614_v8  ;;  %1254 = vmatpush3.bf16.msra.mxu1 %v1625_v10 }
  0x2d   :  { %1269 = vmatprep.mubr.msk.bf16.mxu1 %vm1545_vm0, %v1543_v2  ;;  %1255 = vmatprep.subr.bf16.mxu1 %v1543_v2 }
  0x2f   :  { %314 = vmatpush1.bf16.msra.mxu0 %v1619_v9 }
  0x30   :  { %315 = vmatprep.subr.bf16.mxu0 %v1631_v11  ;;  %1256 = vmatpush3.bf16.msra.mxu1 %v1637_v12 }
  0x31   :  { %1257 = vmatprep.subr.bf16.mxu1 %v1543_v2 }
  0x33   :  { %316 = vmatpush1.bf16.msra.mxu0 %v1644_v13 }
  0x34   :  { %317 = vmatprep.subr.bf16.mxu0 %v1650_v14  ;;  %1258 = vmatpush3.bf16.msra.mxu1 %v1656_v15 }
  0x35   :  { %1259 = vmatprep.subr.bf16.mxu1 %v1543_v2 }
  0x37   :  { %318 = vmatpush1.bf16.msra.mxu0 %v1663_v16 }
  0x38   :  { %319 = vmatprep.subr.bf16.mxu0 %v1669_v17  ;;  %1260 = vmatpush3.bf16.msra.mxu1 %v1675_v18 }
  0x39   :  { %1261 = vmatprep.subr.bf16.mxu1 %v1543_v2 }
  0x3b   :  { %320 = vmatpush1.bf16.msra.mxu0 %v1682_v19 }
  0x3c   :  { %321 = vmatprep.subr.bf16.mxu0 %v1688_v20  ;;  %1262 = vmatpush3.bf16.msra.mxu1 %v1694_v21 }
  0x3d   :  { %1263 = vmatprep.subr.bf16.mxu1 %v1543_v2 }
  0x3f   :  { %322 = vmatpush1.bf16.msra.mxu0 %v1701_v22 }
  0x40   :  { %419 = vmatprep.subr.bf16.mxu0 %v1575_v0  ;;  %1264 = vmatpush3.bf16.msra.mxu1 %v1708_v23 }
  0x41   :  { %1265 = vmatprep.subr.bf16.mxu1 %v1543_v2 }
  0x44   :  { %1266 = vmatpush3.bf16.msra.mxu1 %v1717_v24 }
  0x45   :  { %1267 = vmatprep.subr.bf16.mxu1 %v1543_v2 }
  0x48   :  { %1268 = vmatpush3.bf16.msra.mxu1 %v1728_v25 }
  0x49   :  { %1273 = vmatprep.subr.bf16.mxu1 %v1543_v2 }
  0xe2   :  { %v230_v33 = vpop.f32.mrf.mxu0 }
  0xe3   :  { %v231_v34 = vadd.f32 %v230_v33, %v1769_v30 }
  0xe4   :  { %v232_v36 = vpop.f32.mrf.mxu0 }
  0xe5   :  { %v277_v37 = vadd.f32 %v231_v34, %v51_v32  ;;  %v233_v40 = vadd.f32 %v232_v36, %v1775_v35 }
  0xe6   :  { %v234_v38 = vpop.f32.mrf.mxu0 }
  0xe7   :  { %v1131_v39 = vmul.f32 -1.442695, %v277_v37  ;;  %v287_v43 = vadd.f32 %v285_v41, %v233_v40 }
  0xe8   :  { %v235_v42 = vpop.f32.mrf.mxu0 }
  0xe9   :  { %1429 = vpow2.f32 %v1131_v39  ;;  %v1132_v46 = vmul.f32 -1.442695, %v287_v43  ;;  %v396_v42 = vrot.slane %v1133_v29, 2 }
  0xeb   :  { %v271_v44 = vpop.f32.mrf.mxu1  ;;  %1431 = vpow2.f32 %v1132_v46 }
  0xec   :  { %v272_v55 = vadd.f32 %v271_v44, %v1778_v52 }
  0xed   :  { %v1251_v45 = vpop.f32.mrf.mxu1 }
  0xef   :  { %v274_v47 = vpop.f32.mrf.mxu1 }
  0xf1   :  { %v1252_v48 = vpop.f32.mrf.mxu1 }
  0xf6   :  { %v1430_v49 = vpop.eup %1429 }
  0xf7   :  { %v281_v50 = vadd.f32 1.0, %v1430_v49 }
  0xf8   :  { %v1432_v53 = vpop.eup %1431 }
  0xf9   :  { %1433 = vrcp.f32 %v281_v50  ;;  %v291_v54 = vadd.f32 1.0, %v1432_v53  ;;  %v406_v53 = vrot.slane %v1133_v29, 4 }
  0xfb   :  { %1435 = vrcp.f32 %v291_v54 }
 0x106   :  { %v1434_v57 = vpop.eup %1433 }
 0x107   :  { %v294_v58 = vmul.f32 %v1434_v57, %v272_v55 }
 0x108   :  { %v1436_v60 = vpop.eup %1435 }
 0x109   :  { %v297_v59 = vadd.f32 %v295_v56, %v294_v58  ;;  %v299_v61 = vsub.f32 1.0, %v1436_v60  ;;  %v301_v26 = vmul.f32 0.0, %v1436_v60 }
 0x10b   :  { %1437 = vtanh.f32 %v297_v59 }
 0x118   :  { %v1438_v62 = vpop.eup %1437 }
 0x119   :  { %v300_v63 = vmul.f32 %v1438_v62, %v299_v61 }
 0x11b   :  { %v1781_v28 = vadd.f32 %v301_v26, %v300_v63  ;;  %v1137_v26 = vld [vmem:[%s2118_s0 + $0xc] sm:$0x3f] }
 0x11d   :  { %303 = vst [vmem:[%s2121_s3] sm:$0x3] %v1781_v28  ;;  %v306_v27 = vpack.c.bf16 %v1781_v28, %v1781_v28 }
 0x11f   :  { %340 = vmatmul.mubr.bf16.vlgmr.msra.gmra.mxu0 %v306_v27  ;;  %1270 = vmatmul.mubr.bf16.vlgmr.msra.gmra.mxu1 %v306_v27 }
 0x120   :  { %420 = vmatpush1.bf16.msra.mxu0 %v1580_v1  ;;  %1274 = vmatpush3.bf16.msra.mxu1 %v1625_v10 }
 0x121   :  { %421 = vmatprep.subr.bf16.mxu0 %v1588_v4  ;;  %1275 = vmatprep.subr.bf16.mxu1 %v1543_v2 }
 0x122   :  { %451 = vmatprep.mubr.bf16.mxu0 %v1544_v3  ;;  %1289 = vmatprep.mubr.msk.bf16.mxu1 %vm1545_vm0, %v1543_v2 }
 0x124   :  { %422 = vmatpush1.bf16.msra.mxu0 %v1596_v5  ;;  %1276 = vmatpush3.bf16.msra.mxu1 %v1637_v12 }
 0x125   :  { %423 = vmatprep.subr.bf16.mxu0 %v1602_v6  ;;  %1277 = vmatprep.subr.bf16.mxu1 %v1543_v2 }
 0x128   :  { %424 = vmatpush1.bf16.msra.mxu0 %v1608_v7  ;;  %1278 = vmatpush3.bf16.msra.mxu1 %v1656_v15 }
 0x129   :  { %425 = vmatprep.subr.bf16.mxu0 %v1614_v8  ;;  %1279 = vmatprep.subr.bf16.mxu1 %v1543_v2 }
 0x12c   :  { %426 = vmatpush1.bf16.msra.mxu0 %v1619_v9  ;;  %1280 = vmatpush3.bf16.msra.mxu1 %v1675_v18 }
 0x12d   :  { %427 = vmatprep.subr.bf16.mxu0 %v1631_v11  ;;  %1281 = vmatprep.subr.bf16.mxu1 %v1543_v2 }
 0x130   :  { %428 = vmatpush1.bf16.msra.mxu0 %v1644_v13  ;;  %1282 = vmatpush3.bf16.msra.mxu1 %v1694_v21 }
 0x131   :  { %429 = vmatprep.subr.bf16.mxu0 %v1650_v14  ;;  %1283 = vmatprep.subr.bf16.mxu1 %v1543_v2 }
 0x134   :  { %430 = vmatpush1.bf16.msra.mxu0 %v1663_v16  ;;  %1284 = vmatpush3.bf16.msra.mxu1 %v1708_v23 }
 0x135   :  { %431 = vmatprep.subr.bf16.mxu0 %v1669_v17  ;;  %1285 = vmatprep.subr.bf16.mxu1 %v1543_v2 }
 0x138   :  { %432 = vmatpush1.bf16.msra.mxu0 %v1682_v19  ;;  %1286 = vmatpush3.bf16.msra.mxu1 %v1717_v24 }
 0x139   :  { %433 = vmatprep.subr.bf16.mxu0 %v1688_v20  ;;  %1287 = vmatprep.subr.bf16.mxu1 %v1543_v2 }
 0x13c   :  { %434 = vmatpush1.bf16.msra.mxu0 %v1701_v22  ;;  %1288 = vmatpush3.bf16.msra.mxu1 %v1728_v25 }
 0x13d   :  { %531 = vmatprep.subr.bf16.mxu0 %v1575_v0  ;;  %1293 = vmatprep.subr.bf16.mxu1 %v1543_v2 }
 0x1df   :  { %v341_v31 = vpop.f32.mrf.mxu0  ;;  %v382_v32 = vpop.f32.mrf.mxu1 }
 0x1e0   :  { %v342_v33 = vadd.f32 %v341_v31, %v1769_v30  ;;  %v383_v51 = vadd.f32 %v382_v32, %v1778_v52 }
 0x1e1   :  { %v343_v34 = vpop.f32.mrf.mxu0  ;;  %v1271_v36 = vpop.f32.mrf.mxu1 }
 0x1e2   :  { %v388_v37 = vadd.f32 %v1133_v29, %v342_v33  ;;  %v344_v41 = vadd.f32 %v343_v34, %v1775_v35 }
 0x1e3   :  { %v345_v38 = vpop.f32.mrf.mxu0  ;;  %v385_v39 = vpop.f32.mrf.mxu1 }
 0x1e4   :  { %v1134_v40 = vmul.f32 -1.442695, %v388_v37  ;;  %v398_v45 = vadd.f32 %v396_v42, %v344_v41  ;;  %v508_v39 = vrot.slane %v1137_v26, 2 }
 0x1e5   :  { %v346_v43 = vpop.f32.mrf.mxu0  ;;  %v1272_v44 = vpop.f32.mrf.mxu1 }
 0x1e6   :  { %1439 = vpow2.f32 %v1134_v40  ;;  %v1135_v46 = vmul.f32 -1.442695, %v398_v45 }
 0x1e8   :  { %1441 = vpow2.f32 %v1135_v46 }
 0x1f3   :  { %v1440_v47 = vpop.eup %1439 }
 0x1f4   :  { %v392_v48 = vadd.f32 1.0, %v1440_v47 }
 0x1f5   :  { %v1442_v49 = vpop.eup %1441 }
 0x1f6   :  { %1443 = vrcp.f32 %v392_v48  ;;  %v402_v50 = vadd.f32 1.0, %v1442_v49  ;;  %v518_v49 = vrot.slane %v1137_v26, 4 }
 0x1f8   :  { %1445 = vrcp.f32 %v402_v50 }
 0x203   :  { %v1444_v54 = vpop.eup %1443 }
 0x204   :  { %v405_v55 = vmul.f32 %v1444_v54, %v383_v51 }
 0x205   :  { %v1446_v57 = vpop.eup %1445 }
 0x206   :  { %v408_v56 = vadd.f32 %v406_v53, %v405_v55  ;;  %v410_v58 = vsub.f32 1.0, %v1446_v57  ;;  %v412_v61 = vmul.f32 %v1446_v57, %v1781_v28 }
 0x208   :  { %1447 = vtanh.f32 %v408_v56 }
 0x215   :  { %v1448_v59 = vpop.eup %1447 }
 0x216   :  { %v411_v60 = vmul.f32 %v1448_v59, %v410_v58 }
 0x218   :  { %v1831_v62 = vadd.f32 %v412_v61, %v411_v60  ;;  %v1141_v61 = vld [vmem:[%s2118_s0 + $0x12] sm:$0x3f] }
 0x21a   :  { %1136 = vst [vmem:[%s2121_s3 + $0x2] sm:$0x3] %v1831_v62  ;;  %v418_v63 = vpack.c.bf16 %v1831_v62, %v1831_v62 }
 0x21c   :  { %452 = vmatmul.mubr.bf16.vlgmr.msra.gmra.mxu0 %v418_v63  ;;  %1290 = vmatmul.mubr.bf16.vlgmr.msra.gmra.mxu1 %v418_v63 }
 0x21d   :  { %532 = vmatpush1.bf16.msra.mxu0 %v1580_v1  ;;  %1294 = vmatpush3.bf16.msra.mxu1 %v1625_v10 }
 0x21e   :  { %533 = vmatprep.subr.bf16.mxu0 %v1588_v4  ;;  %1295 = vmatprep.subr.bf16.mxu1 %v1543_v2 }
 0x21f   :  { %563 = vmatprep.mubr.bf16.mxu0 %v1544_v3  ;;  %1309 = vmatprep.mubr.msk.bf16.mxu1 %vm1545_vm0, %v1543_v2 }
 0x221   :  { %534 = vmatpush1.bf16.msra.mxu0 %v1596_v5  ;;  %1296 = vmatpush3.bf16.msra.mxu1 %v1637_v12 }
 0x222   :  { %535 = vmatprep.subr.bf16.mxu0 %v1602_v6  ;;  %1297 = vmatprep.subr.bf16.mxu1 %v1543_v2 }
 0x225   :  { %536 = vmatpush1.bf16.msra.mxu0 %v1608_v7  ;;  %1298 = vmatpush3.bf16.msra.mxu1 %v1656_v15 }
 0x226   :  { %537 = vmatprep.subr.bf16.mxu0 %v1614_v8  ;;  %1299 = vmatprep.subr.bf16.mxu1 %v1543_v2 }
 0x229   :  { %538 = vmatpush1.bf16.msra.mxu0 %v1619_v9  ;;  %1300 = vmatpush3.bf16.msra.mxu1 %v1675_v18 }
 0x22a   :  { %539 = vmatprep.subr.bf16.mxu0 %v1631_v11  ;;  %1301 = vmatprep.subr.bf16.mxu1 %v1543_v2 }
 0x22d   :  { %540 = vmatpush1.bf16.msra.mxu0 %v1644_v13  ;;  %1302 = vmatpush3.bf16.msra.mxu1 %v1694_v21 }
 0x22e   :  { %541 = vmatprep.subr.bf16.mxu0 %v1650_v14  ;;  %1303 = vmatprep.subr.bf16.mxu1 %v1543_v2 }
 0x231   :  { %542 = vmatpush1.bf16.msra.mxu0 %v1663_v16  ;;  %1304 = vmatpush3.bf16.msra.mxu1 %v1708_v23 }
 0x232   :  { %543 = vmatprep.subr.bf16.mxu0 %v1669_v17  ;;  %1305 = vmatprep.subr.bf16.mxu1 %v1543_v2 }
 0x235   :  { %544 = vmatpush1.bf16.msra.mxu0 %v1682_v19  ;;  %1306 = vmatpush3.bf16.msra.mxu1 %v1717_v24 }
 0x236   :  { %545 = vmatprep.subr.bf16.mxu0 %v1688_v20  ;;  %1307 = vmatprep.subr.bf16.mxu1 %v1543_v2 }
 0x239   :  { %546 = vmatpush1.bf16.msra.mxu0 %v1701_v22  ;;  %1308 = vmatpush3.bf16.msra.mxu1 %v1728_v25 }
 0x23a   :  { %643 = vmatprep.subr.bf16.mxu0 %v1575_v0  ;;  %1313 = vmatprep.subr.bf16.mxu1 %v1543_v2 }
 0x2dc   :  { %v453_v28 = vpop.f32.mrf.mxu0  ;;  %v494_v27 = vpop.f32.mrf.mxu1 }
 0x2dd   :  { %v454_v29 = vadd.f32 %v453_v28, %v1769_v30  ;;  %v495_v48 = vadd.f32 %v494_v27, %v1778_v52 }
 0x2de   :  { %v455_v31 = vpop.f32.mrf.mxu0  ;;  %v1291_v32 = vpop.f32.mrf.mxu1 }
 0x2df   :  { %v500_v33 = vadd.f32 %v1137_v26, %v454_v29  ;;  %v456_v38 = vadd.f32 %v455_v31, %v1775_v35 }
 0x2e0   :  { %v457_v34 = vpop.f32.mrf.mxu0  ;;  %v497_v36 = vpop.f32.mrf.mxu1 }
 0x2e1   :  { %v1138_v37 = vmul.f32 -1.442695, %v500_v33  ;;  %v510_v42 = vadd.f32 %v508_v39, %v456_v38  ;;  %v620_v36 = vrot.slane %v1141_v61, 2 }
 0x2e2   :  { %v458_v40 = vpop.f32.mrf.mxu0  ;;  %v1292_v41 = vpop.f32.mrf.mxu1 }
 0x2e3   :  { %1449 = vpow2.f32 %v1138_v37  ;;  %v1139_v43 = vmul.f32 -1.442695, %v510_v42 }
 0x2e5   :  { %1451 = vpow2.f32 %v1139_v43 }
 0x2f0   :  { %v1450_v44 = vpop.eup %1449 }
 0x2f1   :  { %v504_v45 = vadd.f32 1.0, %v1450_v44 }
 0x2f2   :  { %v1452_v46 = vpop.eup %1451 }
 0x2f3   :  { %1453 = vrcp.f32 %v504_v45  ;;  %v514_v47 = vadd.f32 1.0, %v1452_v46  ;;  %v630_v46 = vrot.slane %v1141_v61, 4 }
 0x2f5   :  { %1455 = vrcp.f32 %v514_v47 }
 0x300   :  { %v1454_v50 = vpop.eup %1453 }
 0x301   :  { %v517_v51 = vmul.f32 %v1454_v50, %v495_v48 }
 0x302   :  { %v1456_v54 = vpop.eup %1455 }
 0x303   :  { %v520_v53 = vadd.f32 %v518_v49, %v517_v51  ;;  %v522_v55 = vsub.f32 1.0, %v1456_v54  ;;  %v524_v58 = vmul.f32 %v1456_v54, %v1831_v62 }
 0x305   :  { %1457 = vtanh.f32 %v520_v53 }
 0x312   :  { %v1458_v56 = vpop.eup %1457 }
 0x313   :  { %v523_v57 = vmul.f32 %v1458_v56, %v522_v55 }
 0x315   :  { %v1881_v59 = vadd.f32 %v524_v58, %v523_v57  ;;  %v1145_v58 = vld [vmem:[%s2118_s0 + $0x18] sm:$0x3f] }
 0x317   :  { %1140 = vst [vmem:[%s2121_s3 + $0x4] sm:$0x3] %v1881_v59  ;;  %v530_v60 = vpack.c.bf16 %v1881_v59, %v1881_v59 }
 0x319   :  { %564 = vmatmul.mubr.bf16.vlgmr.msra.gmra.mxu0 %v530_v60  ;;  %1310 = vmatmul.mubr.bf16.vlgmr.msra.gmra.mxu1 %v530_v60 }
 0x31a   :  { %644 = vmatpush1.bf16.msra.mxu0 %v1580_v1  ;;  %1314 = vmatpush3.bf16.msra.mxu1 %v1625_v10 }
 0x31b   :  { %645 = vmatprep.subr.bf16.mxu0 %v1588_v4  ;;  %1315 = vmatprep.subr.bf16.mxu1 %v1543_v2 }
 0x31c   :  { %675 = vmatprep.mubr.bf16.mxu0 %v1544_v3  ;;  %1329 = vmatprep.mubr.msk.bf16.mxu1 %vm1545_vm0, %v1543_v2 }
 0x31e   :  { %646 = vmatpush1.bf16.msra.mxu0 %v1596_v5  ;;  %1316 = vmatpush3.bf16.msra.mxu1 %v1637_v12 }
 0x31f   :  { %647 = vmatprep.subr.bf16.mxu0 %v1602_v6  ;;  %1317 = vmatprep.subr.bf16.mxu1 %v1543_v2 }
 0x322   :  { %648 = vmatpush1.bf16.msra.mxu0 %v1608_v7  ;;  %1318 = vmatpush3.bf16.msra.mxu1 %v1656_v15 }
 0x323   :  { %649 = vmatprep.subr.bf16.mxu0 %v1614_v8  ;;  %1319 = vmatprep.subr.bf16.mxu1 %v1543_v2 }
 0x326   :  { %650 = vmatpush1.bf16.msra.mxu0 %v1619_v9  ;;  %1320 = vmatpush3.bf16.msra.mxu1 %v1675_v18 }
 0x327   :  { %651 = vmatprep.subr.bf16.mxu0 %v1631_v11  ;;  %1321 = vmatprep.subr.bf16.mxu1 %v1543_v2 }
 0x32a   :  { %652 = vmatpush1.bf16.msra.mxu0 %v1644_v13  ;;  %1322 = vmatpush3.bf16.msra.mxu1 %v1694_v21 }
 0x32b   :  { %653 = vmatprep.subr.bf16.mxu0 %v1650_v14  ;;  %1323 = vmatprep.subr.bf16.mxu1 %v1543_v2 }
 0x32e   :  { %654 = vmatpush1.bf16.msra.mxu0 %v1663_v16  ;;  %1324 = vmatpush3.bf16.msra.mxu1 %v1708_v23 }
 0x32f   :  { %655 = vmatprep.subr.bf16.mxu0 %v1669_v17  ;;  %1325 = vmatprep.subr.bf16.mxu1 %v1543_v2 }
 0x332   :  { %656 = vmatpush1.bf16.msra.mxu0 %v1682_v19  ;;  %1326 = vmatpush3.bf16.msra.mxu1 %v1717_v24 }
 0x333   :  { %657 = vmatprep.subr.bf16.mxu0 %v1688_v20  ;;  %1327 = vmatprep.subr.bf16.mxu1 %v1543_v2 }
 0x336   :  { %658 = vmatpush1.bf16.msra.mxu0 %v1701_v22  ;;  %1328 = vmatpush3.bf16.msra.mxu1 %v1728_v25 }
 0x337   :  { %755 = vmatprep.subr.bf16.mxu0 %v1575_v0  ;;  %1333 = vmatprep.subr.bf16.mxu1 %v1543_v2 }
 0x3d9   :  { %v565_v62 = vpop.f32.mrf.mxu0  ;;  %v606_v63 = vpop.f32.mrf.mxu1 }
 0x3da   :  { %v566_v26 = vadd.f32 %v565_v62, %v1769_v30  ;;  %v607_v45 = vadd.f32 %v606_v63, %v1778_v52 }
 0x3db   :  { %v567_v28 = vpop.f32.mrf.mxu0  ;;  %v1311_v27 = vpop.f32.mrf.mxu1 }
 0x3dc   :  { %v612_v29 = vadd.f32 %v1141_v61, %v566_v26  ;;  %v568_v34 = vadd.f32 %v567_v28, %v1775_v35 }
 0x3dd   :  { %v569_v31 = vpop.f32.mrf.mxu0  ;;  %v609_v32 = vpop.f32.mrf.mxu1 }
 0x3de   :  { %v1142_v33 = vmul.f32 -1.442695, %v612_v29  ;;  %v622_v39 = vadd.f32 %v620_v36, %v568_v34  ;;  %v732_v32 = vrot.slane %v1145_v58, 2 }
 0x3df   :  { %v570_v37 = vpop.f32.mrf.mxu0  ;;  %v1312_v38 = vpop.f32.mrf.mxu1 }
 0x3e0   :  { %1459 = vpow2.f32 %v1142_v33  ;;  %v1143_v40 = vmul.f32 -1.442695, %v622_v39 }
 0x3e2   :  { %1461 = vpow2.f32 %v1143_v40 }
 0x3ed   :  { %v1460_v41 = vpop.eup %1459 }
 0x3ee   :  { %v616_v42 = vadd.f32 1.0, %v1460_v41 }
 0x3ef   :  { %v1462_v43 = vpop.eup %1461 }
 0x3f0   :  { %1463 = vrcp.f32 %v616_v42  ;;  %v626_v44 = vadd.f32 1.0, %v1462_v43  ;;  %v742_v43 = vrot.slane %v1145_v58, 4 }
 0x3f2   :  { %1465 = vrcp.f32 %v626_v44 }
 0x3fd   :  { %v1464_v47 = vpop.eup %1463 }
 0x3fe   :  { %v629_v48 = vmul.f32 %v1464_v47, %v607_v45 }
 0x3ff   :  { %v1466_v50 = vpop.eup %1465 }
 0x400   :  { %v632_v49 = vadd.f32 %v630_v46, %v629_v48  ;;  %v634_v51 = vsub.f32 1.0, %v1466_v50  ;;  %v636_v55 = vmul.f32 %v1466_v50, %v1881_v59 }
 0x402   :  { %1467 = vtanh.f32 %v632_v49 }
 0x40f   :  { %v1468_v53 = vpop.eup %1467 }
 0x410   :  { %v635_v54 = vmul.f32 %v1468_v53, %v634_v51 }
 0x412   :  { %v1931_v56 = vadd.f32 %v636_v55, %v635_v54 }
 0x414   :  { %1144 = vst [vmem:[%s2121_s3 + $0x6] sm:$0x3] %v1931_v56  ;;  %v642_v57 = vpack.c.bf16 %v1931_v56, %v1931_v56 }
 0x416   :  { %676 = vmatmul.mubr.bf16.vlgmr.msra.gmra.mxu0 %v642_v57  ;;  %1330 = vmatmul.mubr.bf16.vlgmr.msra.gmra.mxu1 %v642_v57 }
 0x417   :  { %756 = vmatpush1.bf16.msra.mxu0 %v1580_v1  ;;  %1334 = vmatpush3.bf16.msra.mxu1 %v1625_v10 }
 0x418   :  { %757 = vmatprep.subr.bf16.mxu0 %v1588_v4  ;;  %1335 = vmatprep.subr.bf16.mxu1 %v1543_v2 }
 0x419   :  { %787 = vmatprep.mubr.bf16.mxu0 %v1544_v3  ;;  %1349 = vmatprep.mubr.msk.bf16.mxu1 %vm1545_vm0, %v1543_v2 }
 0x41b   :  { %758 = vmatpush1.bf16.msra.mxu0 %v1596_v5  ;;  %1336 = vmatpush3.bf16.msra.mxu1 %v1637_v12 }
 0x41c   :  { %759 = vmatprep.subr.bf16.mxu0 %v1602_v6  ;;  %1337 = vmatprep.subr.bf16.mxu1 %v1543_v2 }
 0x41f   :  { %760 = vmatpush1.bf16.msra.mxu0 %v1608_v7  ;;  %1338 = vmatpush3.bf16.msra.mxu1 %v1656_v15 }
 0x420   :  { %761 = vmatprep.subr.bf16.mxu0 %v1614_v8  ;;  %1339 = vmatprep.subr.bf16.mxu1 %v1543_v2 }
 0x423   :  { %762 = vmatpush1.bf16.msra.mxu0 %v1619_v9  ;;  %1340 = vmatpush3.bf16.msra.mxu1 %v1675_v18 }
 0x424   :  { %763 = vmatprep.subr.bf16.mxu0 %v1631_v11  ;;  %1341 = vmatprep.subr.bf16.mxu1 %v1543_v2 }
 0x427   :  { %764 = vmatpush1.bf16.msra.mxu0 %v1644_v13  ;;  %1342 = vmatpush3.bf16.msra.mxu1 %v1694_v21 }
 0x428   :  { %765 = vmatprep.subr.bf16.mxu0 %v1650_v14  ;;  %1343 = vmatprep.subr.bf16.mxu1 %v1543_v2 }
 0x42b   :  { %766 = vmatpush1.bf16.msra.mxu0 %v1663_v16  ;;  %1344 = vmatpush3.bf16.msra.mxu1 %v1708_v23 }
 0x42c   :  { %767 = vmatprep.subr.bf16.mxu0 %v1669_v17  ;;  %1345 = vmatprep.subr.bf16.mxu1 %v1543_v2 }
 0x42f   :  { %768 = vmatpush1.bf16.msra.mxu0 %v1682_v19  ;;  %1346 = vmatpush3.bf16.msra.mxu1 %v1717_v24 }
 0x430   :  { %769 = vmatprep.subr.bf16.mxu0 %v1688_v20  ;;  %1347 = vmatprep.subr.bf16.mxu1 %v1543_v2 }
 0x433   :  { %770 = vmatpush1.bf16.msra.mxu0 %v1701_v22  ;;  %1348 = vmatpush3.bf16.msra.mxu1 %v1728_v25 }
 0x434   :  { %867 = vmatprep.subr.bf16.mxu0 %v1575_v0  ;;  %1353 = vmatprep.subr.bf16.mxu1 %v1543_v2 }
 0x4d6   :  { %v677_v59 = vpop.f32.mrf.mxu0  ;;  %v718_v60 = vpop.f32.mrf.mxu1 }
 0x4d7   :  { %v678_v61 = vadd.f32 %v677_v59, %v1769_v30  ;;  %v719_v42 = vadd.f32 %v718_v60, %v1778_v52 }
 0x4d8   :  { %v679_v62 = vpop.f32.mrf.mxu0  ;;  %v1331_v63 = vpop.f32.mrf.mxu1 }
 0x4d9   :  { %v724_v26 = vadd.f32 %v1145_v58, %v678_v61  ;;  %v680_v31 = vadd.f32 %v679_v62, %v1775_v35 }
 0x4da   :  { %v681_v28 = vpop.f32.mrf.mxu0  ;;  %v721_v27 = vpop.f32.mrf.mxu1 }
 0x4db   :  { %v1146_v29 = vmul.f32 -1.442695, %v724_v26  ;;  %v734_v36 = vadd.f32 %v732_v32, %v680_v31 }
 0x4dc   :  { %v682_v33 = vpop.f32.mrf.mxu0  ;;  %v1332_v34 = vpop.f32.mrf.mxu1 }
 0x4dd   :  { %1469 = vpow2.f32 %v1146_v29  ;;  %v1147_v37 = vmul.f32 -1.442695, %v734_v36 }
 0x4df   :  { %1471 = vpow2.f32 %v1147_v37 }
 0x4ea   :  { %v1470_v38 = vpop.eup %1469 }
 0x4eb   :  { %v728_v39 = vadd.f32 1.0, %v1470_v38  ;;  %v1509_v38 = vld [vmem:[%s2119_s1 + $0xa8] ss:$12 sps:$4 sm:$0xff]  }
 0x4ec   :  { %v1472_v40 = vpop.eup %1471 }
 0x4ed   :  { %1473 = vrcp.f32 %v728_v39  ;;  %v738_v41 = vadd.f32 1.0, %v1472_v40  ;;  %v1510_v39 = vld [vmem:[%s2119_s1 + $0xb0] ss:$12 sps:$4 sm:$0xff]   ;;  %v1511_v40 = vld [vmem:[%s2119_s1 + $0x94] ss:$12 sps:$4 sm:$0xff]  }
 0x4ef   :  { %1475 = vrcp.f32 %v738_v41  ;;  %v1512_v41 = vld [vmem:[%s2119_s1 + $0x90] ss:$12 sps:$4 sm:$0xff]  }
 0x4fa   :  { %v1474_v44 = vpop.eup %1473 }
 0x4fb   :  { %v741_v45 = vmul.f32 %v1474_v44, %v719_v42  ;;  %v1513_v42 = vld [vmem:[%s2119_s1 + $0x98] ss:$12 sps:$4 sm:$0xff]  }
 0x4fc   :  { %v1476_v47 = vpop.eup %1475  ;;  %v1516_v44 = vld [vmem:[%s2119_s1 + $0x64] ss:$12 sps:$4 sm:$0xff]  }
 0x4fd   :  { %v744_v46 = vadd.f32 %v742_v43, %v741_v45  ;;  %v746_v48 = vsub.f32 1.0, %v1476_v47  ;;  %v748_v51 = vmul.f32 %v1476_v47, %v1931_v56  ;;  %v1514_v43 = vld [vmem:[%s2119_s1 + $0x7c] ss:$12 sps:$4 sm:$0xff]   ;;  %v1517_v45 = vld [vmem:[%s2119_s1 + $0x60] ss:$12 sps:$4 sm:$0xff]  }
 0x4fe   :  { %v1520_v47 = vld [vmem:[%s2119_s1 + $0x34] ss:$12 sps:$4 sm:$0xff]  }
 0x4ff   :  { %1477 = vtanh.f32 %v744_v46  ;;  %v1518_v46 = vld [vmem:[%s2119_s1 + $0x4c] ss:$12 sps:$4 sm:$0xff]  }
 0x50c   :  { %v1478_v49 = vpop.eup %1477 }
 0x50d   :  { %v747_v50 = vmul.f32 %v1478_v49, %v746_v48 }
 0x50f   :  { %v1981_v53 = vadd.f32 %v748_v51, %v747_v50 }
 0x511   :  { %1148 = vst [vmem:[%s2121_s3 + $0x8] sm:$0x3] %v1981_v53  ;;  %v754_v54 = vpack.c.bf16 %v1981_v53, %v1981_v53 }
 0x513   :  { %788 = vmatmul.mubr.bf16.vlgmr.msra.gmra.mxu0 %v754_v54  ;;  %1350 = vmatmul.mubr.bf16.vlgmr.msra.gmra.mxu1 %v754_v54 }
 0x514   :  { %868 = vmatpush1.bf16.msra.mxu0 %v1580_v1  ;;  %1354 = vmatpush3.bf16.msra.mxu1 %v1625_v10  ;;  %v1149_v1 = vld [vmem:[%s2118_s0 + $0x1e] sm:$0x3f] }
 0x515   :  { %869 = vmatprep.subr.bf16.mxu0 %v1588_v4  ;;  %1355 = vmatprep.subr.bf16.mxu1 %v1543_v2  ;;  %v854_v63 = vrot.slane %v1149_v1, 4 }
 0x516   :  { %899 = vmatprep.mubr.bf16.mxu0 %v1544_v3  ;;  %1369 = vmatprep.mubr.msk.bf16.mxu1 %vm1545_vm0, %v1543_v2 }
 0x518   :  { %870 = vmatpush1.bf16.msra.mxu0 %v1596_v5  ;;  %1356 = vmatpush3.bf16.msra.mxu1 %v1637_v12 }
 0x519   :  { %871 = vmatprep.subr.bf16.mxu0 %v1602_v6  ;;  %1357 = vmatprep.subr.bf16.mxu1 %v1543_v2 }
 0x51c   :  { %872 = vmatpush1.bf16.msra.mxu0 %v1608_v7  ;;  %1358 = vmatpush3.bf16.msra.mxu1 %v1656_v15 }
 0x51d   :  { %873 = vmatprep.subr.bf16.mxu0 %v1614_v8  ;;  %1359 = vmatprep.subr.bf16.mxu1 %v1543_v2 }
 0x520   :  { %874 = vmatpush1.bf16.msra.mxu0 %v1619_v9  ;;  %1360 = vmatpush3.bf16.msra.mxu1 %v1675_v18 }
 0x521   :  { %875 = vmatprep.subr.bf16.mxu0 %v1631_v11  ;;  %1361 = vmatprep.subr.bf16.mxu1 %v1543_v2 }
 0x524   :  { %876 = vmatpush1.bf16.msra.mxu0 %v1644_v13  ;;  %1362 = vmatpush3.bf16.msra.mxu1 %v1694_v21 }
 0x525   :  { %877 = vmatprep.subr.bf16.mxu0 %v1650_v14  ;;  %1363 = vmatprep.subr.bf16.mxu1 %v1543_v2  ;;  %v844_v14 = vrot.slane %v1149_v1, 2 }
 0x528   :  { %878 = vmatpush1.bf16.msra.mxu0 %v1663_v16  ;;  %1364 = vmatpush3.bf16.msra.mxu1 %v1708_v23 }
 0x529   :  { %879 = vmatprep.subr.bf16.mxu0 %v1669_v17  ;;  %1365 = vmatprep.subr.bf16.mxu1 %v1543_v2 }
 0x52c   :  { %880 = vmatpush1.bf16.msra.mxu0 %v1682_v19  ;;  %1366 = vmatpush3.bf16.msra.mxu1 %v1717_v24 }
 0x52d   :  { %881 = vmatprep.subr.bf16.mxu0 %v1688_v20  ;;  %1367 = vmatprep.subr.bf16.mxu1 %v1543_v2 }
 0x530   :  { %882 = vmatpush1.bf16.msra.mxu0 %v1701_v22  ;;  %1368 = vmatpush3.bf16.msra.mxu1 %v1728_v25 }
 0x531   :  { %979 = vmatprep.subr.bf16.mxu0 %v1575_v0  ;;  %1373 = vmatprep.subr.bf16.mxu1 %v1543_v2 }
 0x5d3   :  { %v789_v4 = vpop.f32.mrf.mxu0  ;;  %v830_v5 = vpop.f32.mrf.mxu1 }
 0x5d4   :  { %v790_v6 = vadd.f32 %v789_v4, %v1769_v30  ;;  %v831_v62 = vadd.f32 %v830_v5, %v1778_v52 }
 0x5d5   :  { %v791_v7 = vpop.f32.mrf.mxu0  ;;  %v1351_v8 = vpop.f32.mrf.mxu1 }
 0x5d6   :  { %v836_v9 = vadd.f32 %v1149_v1, %v790_v6  ;;  %v792_v13 = vadd.f32 %v791_v7, %v1775_v35 }
 0x5d7   :  { %v793_v10 = vpop.f32.mrf.mxu0  ;;  %v833_v11 = vpop.f32.mrf.mxu1 }
 0x5d8   :  { %v1150_v12 = vmul.f32 -1.442695, %v836_v9  ;;  %v846_v56 = vadd.f32 %v844_v14, %v792_v13 }
 0x5d9   :  { %v794_v0 = vpop.f32.mrf.mxu0  ;;  %v1352_v55 = vpop.f32.mrf.mxu1 }
 0x5da   :  { %1479 = vpow2.f32 %v1150_v12  ;;  %v1151_v57 = vmul.f32 -1.442695, %v846_v56 }
 0x5dc   :  { %1481 = vpow2.f32 %v1151_v57  ;;  %v1157_v57 = vld [vmem:[%s2118_s0 + $0x2a] sm:$0x3f] }
 0x5e7   :  { %v1480_v58 = vpop.eup %1479 }
 0x5e8   :  { %v840_v59 = vadd.f32 1.0, %v1480_v58 }
 0x5e9   :  { %v1482_v60 = vpop.eup %1481 }
 0x5ea   :  { %1483 = vrcp.f32 %v840_v59  ;;  %v850_v61 = vadd.f32 1.0, %v1482_v60 }
 0x5ec   :  { %1485 = vrcp.f32 %v850_v61 }
 0x5f7   :  { %v1484_v26 = vpop.eup %1483 }
 0x5f8   :  { %v853_v28 = vmul.f32 %v1484_v26, %v831_v62 }
 0x5f9   :  { %v1486_v29 = vpop.eup %1485 }
 0x5fa   :  { %v856_v27 = vadd.f32 %v854_v63, %v853_v28  ;;  %v858_v31 = vsub.f32 1.0, %v1486_v29  ;;  %v860_v34 = vmul.f32 %v1486_v29, %v1981_v53 }
 0x5fc   :  { %1487 = vtanh.f32 %v856_v27 }
 0x609   :  { %v1488_v32 = vpop.eup %1487 }
 0x60a   :  { %v859_v33 = vmul.f32 %v1488_v32, %v858_v31  ;;  %v1068_v31 = vrot.slane %v1157_v57, 2 }
 0x60c   :  { %v2031_v36 = vadd.f32 %v860_v34, %v859_v33 }
 0x60e   :  { %1152 = vst [vmem:[%s2121_s3 + $0xa] sm:$0x3] %v2031_v36  ;;  %v866_v37 = vpack.c.bf16 %v2031_v36, %v2031_v36 }
 0x610   :  { %900 = vmatmul.mubr.bf16.vlgmr.msra.gmra.mxu0 %v866_v37  ;;  %1370 = vmatmul.mubr.bf16.vlgmr.msra.gmra.mxu1 %v866_v37 }
 0x611   :  { %980 = vmatpush1.bf16.msra.mxu0 %v1509_v38  ;;  %1374 = vmatpush3.bf16.msra.mxu1 %v1510_v39 }
 0x612   :  { %981 = vmatprep.subr.bf16.mxu0 %v1511_v40  ;;  %1375 = vmatprep.subr.bf16.mxu1 %v1543_v2 }
 0x613   :  { %1011 = vmatprep.mubr.bf16.mxu0 %v1544_v3  ;;  %1389 = vmatprep.mubr.msk.bf16.mxu1 %vm1545_vm0, %v1543_v2  ;;  %v1515_v3 = vld [vmem:[%s2119_s1 + $0x78] ss:$12 sps:$4 sm:$0xff]  }
 0x615   :  { %982 = vmatpush1.bf16.msra.mxu0 %v1512_v41  ;;  %1376 = vmatpush3.bf16.msra.mxu1 %v1513_v42  ;;  %v1078_v41 = vrot.slane %v1157_v57, 4 }
 0x616   :  { %983 = vmatprep.subr.bf16.mxu0 %v1514_v43  ;;  %1377 = vmatprep.subr.bf16.mxu1 %v1543_v2 }
 0x619   :  { %984 = vmatpush1.bf16.msra.mxu0 %v1515_v3  ;;  %1378 = vmatpush3.bf16.msra.mxu1 %v1656_v15  ;;  %v1519_v15 = vld [vmem:[%s2119_s1 + $0x48] ss:$12 sps:$4 sm:$0xff]  }
 0x61a   :  { %985 = vmatprep.subr.bf16.mxu0 %v1516_v44  ;;  %1379 = vmatprep.subr.bf16.mxu1 %v1543_v2 }
 0x61d   :  { %986 = vmatpush1.bf16.msra.mxu0 %v1517_v45  ;;  %1380 = vmatpush3.bf16.msra.mxu1 %v1675_v18 }
 0x61e   :  { %987 = vmatprep.subr.bf16.mxu0 %v1518_v46  ;;  %1381 = vmatprep.subr.bf16.mxu1 %v1543_v2 }
 0x621   :  { %988 = vmatpush1.bf16.msra.mxu0 %v1519_v15  ;;  %1382 = vmatpush3.bf16.msra.mxu1 %v1694_v21 }
 0x622   :  { %989 = vmatprep.subr.bf16.mxu0 %v1520_v47  ;;  %1383 = vmatprep.subr.bf16.mxu1 %v1543_v2 }
 0x625   :  { %990 = vmatpush1.bf16.msra.mxu0 %v1663_v16  ;;  %1384 = vmatpush3.bf16.msra.mxu1 %v1708_v23  ;;  %v1153_v16 = vld [vmem:[%s2118_s0 + $0x24] sm:$0x3f]  ;;  %s1546_s0 = smov [#allocation2]  }
 0x626   :  { %991 = vmatprep.subr.bf16.mxu0 %v1669_v17  ;;  %1385 = vmatprep.subr.bf16.mxu1 %v1543_v2  ;;  %v956_v50 = vrot.slane %v1153_v16, 2  ;;  %v966_v7 = vrot.slane %v1153_v16, 4  ;;  %s1097_s12 = sshll.u32 %s1546_s0, 4  ;;  %s1098_s12 = int_to_ptr.vmem [resolvable:$true] %s1097_s12 }
 0x627   :  { %s1521_s2 = scalar_lea.vmem %s1098_s12, 32  ;;  %p1526_p1 = scmp.lt.s32.totalorder %s1098_s12, %s1098_s12 }
 0x628   :  { %p1522_p0 = scmp.ne.s32.totalorder %s1098_s12, %s1521_s2  ;;  %p1527_p2 = scmp.lt.s32.totalorder %s1521_s2, %s1521_s2 }
 0x629   :  { %992 = vmatpush1.bf16.msra.mxu0 %v1682_v19  ;;  %1386 = vmatpush3.bf16.msra.mxu1 %v1717_v24 }
 0x62a   :  { %993 = vmatprep.subr.bf16.mxu0 %v1688_v20  ;;  %1387 = vmatprep.subr.bf16.mxu1 %v1543_v2  ;;  %p1528_p3 = por %p1527_p2, %p1526_p1 }
 0x62c   :  { %p1529_p4 = pnand %p1528_p3, %p1522_p0 }
 0x62d   :  { %994 = vmatpush1.bf16.msra.mxu0 %v1701_v22  ;;  %1388 = vmatpush3.bf16.msra.mxu1 %v1728_v25 }
 0x6d0   :  { %v901_v18 = vpop.f32.mrf.mxu0  ;;  %v942_v17 = vpop.f32.mrf.mxu1 }
 0x6d1   :  { %v902_v21 = vadd.f32 %v901_v18, %v1769_v30  ;;  %v943_v6 = vadd.f32 %v942_v17, %v1778_v52 }
 0x6d2   :  { %v903_v23 = vpop.f32.mrf.mxu0  ;;  %v1371_v19 = vpop.f32.mrf.mxu1 }
 0x6d3   :  { %v948_v48 = vadd.f32 %v1153_v16, %v902_v21  ;;  %v904_v2 = vadd.f32 %v903_v23, %v1775_v35 }
 0x6d4   :  { %v905_v24 = vpop.f32.mrf.mxu0  ;;  %v945_v49 = vpop.f32.mrf.mxu1 }
 0x6d5   :  { %v1154_v20 = vmul.f32 -1.442695, %v948_v48  ;;  %v958_v25 = vadd.f32 %v956_v50, %v904_v2 }
 0x6d6   :  { %v906_v22 = vpop.f32.mrf.mxu0  ;;  %v1372_v51 = vpop.f32.mrf.mxu1 }
 0x6d7   :  { %1489 = vpow2.f32 %v1154_v20  ;;  %v1155_v53 = vmul.f32 -1.442695, %v958_v25 }
 0x6d9   :  { %1491 = vpow2.f32 %v1155_v53 }
 0x6e4   :  { %v1490_v54 = vpop.eup %1489 }
 0x6e5   :  { %v952_v1 = vadd.f32 1.0, %v1490_v54 }
 0x6e6   :  { %v1492_v4 = vpop.eup %1491 }
 0x6e7   :  { %1493 = vrcp.f32 %v952_v1  ;;  %v962_v5 = vadd.f32 1.0, %v1492_v4 }
 0x6e9   :  { %1495 = vrcp.f32 %v962_v5 }
 0x6f4   :  { %v1494_v8 = vpop.eup %1493 }
 0x6f5   :  { %v965_v9 = vmul.f32 %v1494_v8, %v943_v6 }
 0x6f6   :  { %v1496_v11 = vpop.eup %1495 }
 0x6f7   :  { %v968_v10 = vadd.f32 %v966_v7, %v965_v9  ;;  %v970_v12 = vsub.f32 1.0, %v1496_v11  ;;  %v972_v0 = vmul.f32 %v1496_v11, %v2031_v36 }
 0x6f9   :  { %1497 = vtanh.f32 %v968_v10 }
 0x706   :  { %v1498_v13 = vpop.eup %1497 }
 0x707   :  { %v971_v14 = vmul.f32 %v1498_v13, %v970_v12 }
 0x709   :  { %v973_v55 = vadd.f32 %v972_v0, %v971_v14 }
 0x70b   :  { %1156 = vst [vmem:[%s2121_s3 + $0xc] sm:$0x3] %v973_v55  ;;  %v978_v56 = vpack.c.bf16 %v973_v55, %v973_v55 }
 0x70d   :  { %1012 = vmatmul.mubr.bf16.vlgmr.msra.gmra.mxu0 %v978_v56  ;;  %1390 = vmatmul.mubr.bf16.vlgmr.msra.gmra.mxu1 %v978_v56 }
 0x7cd   :  { %v1013_v58 = vpop.f32.mrf.mxu0  ;;  %v1054_v59 = vpop.f32.mrf.mxu1 }
 0x7ce   :  { %v1014_v60 = vadd.f32 %v1013_v58, %v1769_v30  ;;  %v1055_v40 = vadd.f32 %v1054_v59, %v1778_v52 }
 0x7cf   :  { %v1015_v61 = vpop.f32.mrf.mxu0  ;;  %v1391_v62 = vpop.f32.mrf.mxu1 }
 0x7d0   :  { %v1060_v63 = vadd.f32 %v1157_v57, %v1014_v60  ;;  %v1016_v29 = vadd.f32 %v1015_v61, %v1775_v35 }
 0x7d1   :  { %v1017_v26 = vpop.f32.mrf.mxu0  ;;  %v1057_v28 = vpop.f32.mrf.mxu1 }
 0x7d2   :  { %v1158_v27 = vmul.f32 -1.442695, %v1060_v63  ;;  %v1070_v34 = vadd.f32 %v1068_v31, %v1016_v29 }
 0x7d3   :  { %v1018_v32 = vpop.f32.mrf.mxu0  ;;  %v1392_v33 = vpop.f32.mrf.mxu1 }
 0x7d4   :  { %1499 = vpow2.f32 %v1158_v27  ;;  %v1159_v36 = vmul.f32 -1.442695, %v1070_v34 }
 0x7d6   :  { %1501 = vpow2.f32 %v1159_v36 }
 0x7e1   :  { %v1500_v37 = vpop.eup %1499 }
 0x7e2   :  { %v1064_v38 = vadd.f32 1.0, %v1500_v37 }
 0x7e3   :  { %v1502_v39 = vpop.eup %1501 }
 0x7e4   :  { %1503 = vrcp.f32 %v1064_v38  ;;  %v1074_v30 = vadd.f32 1.0, %v1502_v39 }
 0x7e6   :  { %1505 = vrcp.f32 %v1074_v30 }
 0x7f1   :  { %v1504_v42 = vpop.eup %1503 }
 0x7f2   :  { %v1077_v43 = vmul.f32 %v1504_v42, %v1055_v40 }
 0x7f3   :  { %v1506_v35 = vpop.eup %1505 }
 0x7f4   :  { %v1080_v3 = vadd.f32 %v1078_v41, %v1077_v43  ;;  %v1082_v44 = vsub.f32 1.0, %v1506_v35  ;;  %v1084_v15 = vmul.f32 %v1506_v35, %v973_v55 }
 0x7f6   :  { %1507 = vtanh.f32 %v1080_v3 }
 0x803   :  { %v1508_v45 = vpop.eup %1507 }
 0x804   :  { %v1083_v46 = vmul.f32 %v1508_v45, %v1082_v44 }
 0x806   :  { %v1085_v47 = vadd.f32 %v1084_v15, %v1083_v46 }
 0x808   :  { %1160 = vst [vmem:[%s2121_s3 + $0xe] sm:$0x3] %v1085_v47  ;;  %1088 = vst [vmem:[#allocation2] sm:$0x3] %v1085_v47 }
 0x809   :  { %1532 = shalt.err (!%p1529_p4)
}
 0x80a   :  { %1100 = dma.vmem_to_hbm [thread:$0]  %s1098_s12, 32, %s2122_s4, [#allocation3]  }
 0x80b   :  { %1541 = dma.done.wait [#allocation3], 32  }
 0x80c   :  { %1542 = vsyncadd [#allocation3], 4294967264 }
 0x80d   :  { %1106 = vsyncpa [#allocation3], 1 }

</bundles_post_ra>
